<compile_context>
chip_gen: v7x
topology: tpu7x:2x2x1
jax: 0.10.0
libtpu: 0.0.40
codegen_flags: <defaults>
</compile_context>

<pallas_src>
import functools

import jax
import jax.numpy as jnp
from jax.experimental import pallas as pl
from jax.experimental.pallas import tpu as pltpu

HID = 128            # padded hidden width (>= max(zlist) = 128, lane-aligned)
NEG_SLOPE = 0.01
VMEM_BUDGET = 12 << 20   # conservative: fits v5e's 16 MiB default scoped VMEM


def _round_up(n, m):
    return ((n + m - 1) // m) * m


def autoencoder_kernel(x_ref, w1_ref, wmid_ref, w6_ref, b_ref, o_ref):
    b = b_ref[...]                                # (8, xy_p) f32; rows 0..5 = b1..b6

    def layer(h_bf16, w_bf16, bias_row):
        acc = jnp.dot(h_bf16, w_bf16, preferred_element_type=jnp.float32) + bias_row
        # max(v, 0.01*v) == leaky_relu(v) for slope in (0, 1): one VPU op.
        return jnp.maximum(acc, NEG_SLOPE * acc)

    h = x_ref[...].astype(jnp.bfloat16)

    # ---- encoder: xy_p -> 128 -> 128 -> 128 (true widths 32/64/128, zero-padded)
    h = layer(h, w1_ref[...], b[0:1, :HID]).astype(jnp.bfloat16)
    h = layer(h, wmid_ref[0], b[1:2, :HID]).astype(jnp.bfloat16)
    h = layer(h, wmid_ref[1], b[2:3, :HID]).astype(jnp.bfloat16)

    # ---- decoder: 128 -> 128 -> 128 -> xy_p
    h = layer(h, wmid_ref[2], b[3:4, :HID]).astype(jnp.bfloat16)
    h = layer(h, wmid_ref[3], b[4:5, :HID]).astype(jnp.bfloat16)
    h = layer(h, w6_ref[...], b[5:6, :])          # keep last layer in f32

    o_ref[...] = h.astype(o_ref.dtype)


def init_params(key, xy, zlist=(32, 64, 128)):
    """Deterministic init mirroring PyTorch nn.Linear default (U[-1/sqrt(fan_in), +])."""
    dims = [xy, zlist[0], zlist[1], zlist[2], zlist[1], zlist[0], xy]
    params = []
    for i in range(6):
        fan_in, fan_out = dims[i], dims[i + 1]
        key, kw, kb = jax.random.split(key, 3)
        bound = 1.0 / (fan_in ** 0.5)
        w = jax.random.uniform(kw, (fan_in, fan_out), jnp.float32, -bound, bound)
        b = jax.random.uniform(kb, (1, fan_out), jnp.float32, -bound, bound)
        params.append((w, b))
    return params


def pack_params(params, xy):
    """Zero-pad hidden widths to HID, pad xy to a multiple of 128, bf16 weights,
    pack the six biases into one lane-aligned f32 slab."""
    xy_p = _round_up(max(xy, HID), 128)
    (w1, b1), (w2, b2), (w3, b3), (w4, b4), (w5, b5), (w6, b6) = params

    def pad_to(a, shape):
        return jnp.pad(a, [(0, s - d) for d, s in zip(a.shape, shape)])

    w1p = pad_to(w1, (xy_p, HID)).astype(jnp.bfloat16)
    wmid = jnp.stack(
        [pad_to(w, (HID, HID)).astype(jnp.bfloat16) for w in (w2, w3, w4, w5)],
        axis=0)                                            # (4, 128, 128) bf16
    w6p = pad_to(w6, (HID, xy_p)).astype(jnp.bfloat16)

    bias = jnp.zeros((8, xy_p), jnp.float32)               # one lane-aligned slab
    for i, b in enumerate((b1, b2, b3, b4, b5, b6)):
        bias = bias.at[i, :b.shape[-1]].set(b.reshape(-1))
    return w1p, wmid, w6p, bias


@functools.partial(jax.jit, static_argnames=("block_batch",))
def autoencoder_forward(x, w1p, wmid, w6p, bias, *, block_batch=512):
    batch, xy = x.shape
    xy_p = w1p.shape[0]
    io_item = jnp.dtype(x.dtype).itemsize

    # ---- batch tile selection --------------------------------------------
    tb = min(block_batch, _round_up(batch, 8))
    if batch > 8:
        # keep >=2 grid steps so v7x's two TensorCores both get work
        tb = min(tb, _round_up((batch + 1) // 2, 8))

    # keep double-buffered x/out tiles + resident params under the VMEM budget
    param_bytes = 2 * ((xy_p * HID + 4 * HID * HID + HID * xy_p) * 2 + 8 * xy_p * 4)
    max_rows = max(8, (VMEM_BUDGET - param_bytes) // (4 * xy_p * io_item))
    tb = min(tb, max_rows)
    tb = max(8, (tb // 8) * 8)

    padded_batch = _round_up(batch, tb)

    xp = x
    if padded_batch != batch or xy_p != xy:
        # Only triggers for ragged shapes; demo shapes avoid this HBM copy.
        xp = jnp.pad(xp, ((0, padded_batch - batch), (0, xy_p - xy)))

    grid = (padded_batch // tb,)
    out = pl.pallas_call(
        autoencoder_kernel,
        out_shape=jax.ShapeDtypeStruct((padded_batch, xy_p), x.dtype),
        grid=grid,
        in_specs=[
            pl.BlockSpec((tb, xy_p), lambda i: (i, 0)),        # x tile (pipelined)
            pl.BlockSpec((xy_p, HID), lambda i: (0, 0)),       # W1     (resident)
            pl.BlockSpec((4, HID, HID), lambda i: (0, 0, 0)),  # W2..W5 (resident)
            pl.BlockSpec((HID, xy_p), lambda i: (0, 0)),       # W6     (resident)
            pl.BlockSpec((8, xy_p), lambda i: (0, 0)),         # packed biases
        ],
        out_specs=pl.BlockSpec((tb, xy_p), lambda i: (i, 0)),
        compiler_params=pltpu.CompilerParams(
            dimension_semantics=("parallel",)),
    )(xp, w1p, wmid, w6p, bias)

    if padded_batch != batch or xy_p != xy:
        out = out[:batch, :xy]
    return out


def reference_forward(x, params, operand_dtype=jnp.float32):
    """Plain-JAX reference; operand_dtype=bf16 mirrors the kernel's MXU casts."""
    h = x.astype(jnp.float32)
    for w, b in params:
        acc = jnp.dot(h.astype(operand_dtype), w.astype(operand_dtype),
                      preferred_element_type=jnp.float32) + b
        h = jnp.where(acc > 0, acc, NEG_SLOPE * acc)
    return h


if __name__ == "__main__":
    key = jax.random.PRNGKey(0)
    k_x, k_p = jax.random.split(key)

    batch = 512              # multiple of the batch tile -> no wrapper pad/slice
    xy = 256                 # flattened onshore field size (multiple of 128)
    # Stream activations in bf16 end-to-end (kernel I/O follows x.dtype).
    x = jax.random.normal(k_x, (batch, xy), jnp.float32).astype(jnp.bfloat16)

    params = init_params(k_p, xy, zlist=(32, 64, 128))
    w1p, wmid, w6p, bias = pack_params(params, xy)

    out = autoencoder_forward(x, w1p, wmid, w6p, bias)   # block_batch=512 -> grid=2
    out = jax.block_until_ready(out)
    assert out.shape == (batch, xy), out.shape
    assert out.dtype == x.dtype, out.dtype

    # Tight check against a reference using the same bf16-operand / f32-accumulate math.
    ref_bf16 = reference_forward(x, params, operand_dtype=jnp.bfloat16)
    assert jnp.allclose(out.astype(jnp.float32), ref_bf16, atol=2e-2, rtol=2e-2), \
        "mismatch vs bf16-operand reference"

    # Loose semantic check against the pure-f32 PyTorch-equivalent math.
    ref_f32 = reference_forward(x, params, operand_dtype=jnp.float32)
    assert jnp.allclose(out.astype(jnp.float32), ref_f32, atol=1e-1, rtol=1e-1), \
        "mismatch vs f32 reference"

    print("KERNEL_OK")
</pallas_src>

<mosaic_0001>
module attributes {stable_mosaic.version = 11 : i64} {
  func.func @autoencoder_kernel(%arg0: i32, %arg1: memref<256x256xbf16, #tpu.memory_space<vmem>>, %arg2: memref<256x128xbf16, #tpu.memory_space<vmem>>, %arg3: memref<4x128x128xbf16, #tpu.memory_space<vmem>>, %arg4: memref<128x256xbf16, #tpu.memory_space<vmem>>, %arg5: memref<8x256xf32, #tpu.memory_space<vmem>>, %arg6: memref<256x256xbf16, #tpu.memory_space<vmem>>) attributes {dimension_semantics = [#tpu.dimension_semantics<parallel>], iteration_bounds = array<i64: 2>, scalar_prefetch = 0 : i64, scratch_operands = 0 : i64, tpu.core_type = #tpu.core_type<tc>, window_params = [{transform_indices = @transform_0, window_bounds = array<i64: 256, 256>}, {pipeline_mode = #tpu.pipeline_mode<synchronous>, transform_indices = @transform_1, window_bounds = array<i64: 256, 128>}, {pipeline_mode = #tpu.pipeline_mode<synchronous>, transform_indices = @transform_2, window_bounds = array<i64: 4, 128, 128>}, {pipeline_mode = #tpu.pipeline_mode<synchronous>, transform_indices = @transform_3, window_bounds = array<i64: 128, 256>}, {pipeline_mode = #tpu.pipeline_mode<synchronous>, transform_indices = @transform_4, window_bounds = array<i64: 8, 256>}, {transform_indices = @transform_5, window_bounds = array<i64: 256, 256>}]} {
    %c0 = arith.constant 0 : index
    %c0_0 = arith.constant 0 : index
    %0 = vector.load %arg5[%c0, %c0_0] : memref<8x256xf32, #tpu.memory_space<vmem>>, vector<8x256xf32>
    %c0_1 = arith.constant 0 : index
    %c0_2 = arith.constant 0 : index
    %1 = vector.load %arg1[%c0_1, %c0_2] : memref<256x256xbf16, #tpu.memory_space<vmem>>, vector<256x256xbf16>
    %c0_3 = arith.constant 0 : index
    %c0_4 = arith.constant 0 : index
    %2 = vector.load %arg2[%c0_3, %c0_4] : memref<256x128xbf16, #tpu.memory_space<vmem>>, vector<256x128xbf16>
    %3 = vector.extract_strided_slice %0 {offsets = [0, 0], sizes = [1, 128], strides = [1, 1]} : vector<8x256xf32> to vector<1x128xf32>
    %cst = arith.constant dense<0.000000e+00> : vector<256x128xf32>
    %4 = tpu.matmul %1, %2, %cst {dimension_numbers = #tpu.dot_dimension_numbers<[1], [0], [0], [1], [0, 0, 1, 1], [], []>} : vector<256x256xbf16>, vector<256x128xbf16>, vector<256x128xf32> -> vector<256x128xf32>
    %5 = vector.broadcast %3 : vector<1x128xf32> to vector<256x128xf32>
    %6 = arith.addf %4, %5 : vector<256x128xf32>
    %cst_5 = arith.constant 0.00999999977 : f32
    %7 = vector.broadcast %cst_5 : f32 to vector<256x128xf32>
    %8 = arith.mulf %7, %6 : vector<256x128xf32>
    %9 = arith.maximumf %6, %8 : vector<256x128xf32>
    %10 = arith.truncf %9 : vector<256x128xf32> to vector<256x128xbf16>
    %c0_6 = arith.constant 0 : index
    %c0_7 = arith.constant 0 : index
    %c0_8 = arith.constant 0 : index
    %11 = vector.load %arg3[%c0_6, %c0_7, %c0_8] : memref<4x128x128xbf16, #tpu.memory_space<vmem>>, vector<1x128x128xbf16>
    %12 = vector.shape_cast %11 : vector<1x128x128xbf16> to vector<128x128xbf16>
    %13 = vector.extract_strided_slice %0 {offsets = [1, 0], sizes = [1, 128], strides = [1, 1]} : vector<8x256xf32> to vector<1x128xf32>
    %cst_9 = arith.constant dense<0.000000e+00> : vector<256x128xf32>
    %14 = tpu.matmul %10, %12, %cst_9 {dimension_numbers = #tpu.dot_dimension_numbers<[1], [0], [0], [1], [0, 0, 1, 1], [], []>} : vector<256x128xbf16>, vector<128x128xbf16>, vector<256x128xf32> -> vector<256x128xf32>
    %15 = vector.broadcast %13 : vector<1x128xf32> to vector<256x128xf32>
    %16 = arith.addf %14, %15 : vector<256x128xf32>
    %cst_10 = arith.constant 0.00999999977 : f32
    %17 = vector.broadcast %cst_10 : f32 to vector<256x128xf32>
    %18 = arith.mulf %17, %16 : vector<256x128xf32>
    %19 = arith.maximumf %16, %18 : vector<256x128xf32>
    %20 = arith.truncf %19 : vector<256x128xf32> to vector<256x128xbf16>
    %c1 = arith.constant 1 : index
    %c0_11 = arith.constant 0 : index
    %c0_12 = arith.constant 0 : index
    %21 = vector.load %arg3[%c1, %c0_11, %c0_12] : memref<4x128x128xbf16, #tpu.memory_space<vmem>>, vector<1x128x128xbf16>
    %22 = vector.shape_cast %21 : vector<1x128x128xbf16> to vector<128x128xbf16>
    %23 = vector.extract_strided_slice %0 {offsets = [2, 0], sizes = [1, 128], strides = [1, 1]} : vector<8x256xf32> to vector<1x128xf32>
    %cst_13 = arith.constant dense<0.000000e+00> : vector<256x128xf32>
    %24 = tpu.matmul %20, %22, %cst_13 {dimension_numbers = #tpu.dot_dimension_numbers<[1], [0], [0], [1], [0, 0, 1, 1], [], []>} : vector<256x128xbf16>, vector<128x128xbf16>, vector<256x128xf32> -> vector<256x128xf32>
    %25 = vector.broadcast %23 : vector<1x128xf32> to vector<256x128xf32>
    %26 = arith.addf %24, %25 : vector<256x128xf32>
    %cst_14 = arith.constant 0.00999999977 : f32
    %27 = vector.broadcast %cst_14 : f32 to vector<256x128xf32>
    %28 = arith.mulf %27, %26 : vector<256x128xf32>
    %29 = arith.maximumf %26, %28 : vector<256x128xf32>
    %30 = arith.truncf %29 : vector<256x128xf32> to vector<256x128xbf16>
    %c2 = arith.constant 2 : index
    %c0_15 = arith.constant 0 : index
    %c0_16 = arith.constant 0 : index
    %31 = vector.load %arg3[%c2, %c0_15, %c0_16] : memref<4x128x128xbf16, #tpu.memory_space<vmem>>, vector<1x128x128xbf16>
    %32 = vector.shape_cast %31 : vector<1x128x128xbf16> to vector<128x128xbf16>
    %33 = vector.extract_strided_slice %0 {offsets = [3, 0], sizes = [1, 128], strides = [1, 1]} : vector<8x256xf32> to vector<1x128xf32>
    %cst_17 = arith.constant dense<0.000000e+00> : vector<256x128xf32>
    %34 = tpu.matmul %30, %32, %cst_17 {dimension_numbers = #tpu.dot_dimension_numbers<[1], [0], [0], [1], [0, 0, 1, 1], [], []>} : vector<256x128xbf16>, vector<128x128xbf16>, vector<256x128xf32> -> vector<256x128xf32>
    %35 = vector.broadcast %33 : vector<1x128xf32> to vector<256x128xf32>
    %36 = arith.addf %34, %35 : vector<256x128xf32>
    %cst_18 = arith.constant 0.00999999977 : f32
    %37 = vector.broadcast %cst_18 : f32 to vector<256x128xf32>
    %38 = arith.mulf %37, %36 : vector<256x128xf32>
    %39 = arith.maximumf %36, %38 : vector<256x128xf32>
    %40 = arith.truncf %39 : vector<256x128xf32> to vector<256x128xbf16>
    %c3 = arith.constant 3 : index
    %c0_19 = arith.constant 0 : index
    %c0_20 = arith.constant 0 : index
    %41 = vector.load %arg3[%c3, %c0_19, %c0_20] : memref<4x128x128xbf16, #tpu.memory_space<vmem>>, vector<1x128x128xbf16>
    %42 = vector.shape_cast %41 : vector<1x128x128xbf16> to vector<128x128xbf16>
    %43 = vector.extract_strided_slice %0 {offsets = [4, 0], sizes = [1, 128], strides = [1, 1]} : vector<8x256xf32> to vector<1x128xf32>
    %cst_21 = arith.constant dense<0.000000e+00> : vector<256x128xf32>
    %44 = tpu.matmul %40, %42, %cst_21 {dimension_numbers = #tpu.dot_dimension_numbers<[1], [0], [0], [1], [0, 0, 1, 1], [], []>} : vector<256x128xbf16>, vector<128x128xbf16>, vector<256x128xf32> -> vector<256x128xf32>
    %45 = vector.broadcast %43 : vector<1x128xf32> to vector<256x128xf32>
    %46 = arith.addf %44, %45 : vector<256x128xf32>
    %cst_22 = arith.constant 0.00999999977 : f32
    %47 = vector.broadcast %cst_22 : f32 to vector<256x128xf32>
    %48 = arith.mulf %47, %46 : vector<256x128xf32>
    %49 = arith.maximumf %46, %48 : vector<256x128xf32>
    %50 = arith.truncf %49 : vector<256x128xf32> to vector<256x128xbf16>
    %c0_23 = arith.constant 0 : index
    %c0_24 = arith.constant 0 : index
    %51 = vector.load %arg4[%c0_23, %c0_24] : memref<128x256xbf16, #tpu.memory_space<vmem>>, vector<128x256xbf16>
    %52 = vector.extract_strided_slice %0 {offsets = [5, 0], sizes = [1, 256], strides = [1, 1]} : vector<8x256xf32> to vector<1x256xf32>
    %cst_25 = arith.constant dense<0.000000e+00> : vector<256x256xf32>
    %53 = tpu.matmul %50, %51, %cst_25 {dimension_numbers = #tpu.dot_dimension_numbers<[1], [0], [0], [1], [0, 0, 1, 1], [], []>} : vector<256x128xbf16>, vector<128x256xbf16>, vector<256x256xf32> -> vector<256x256xf32>
    %54 = vector.broadcast %52 : vector<1x256xf32> to vector<256x256xf32>
    %55 = arith.addf %53, %54 : vector<256x256xf32>
    %cst_26 = arith.constant 0.00999999977 : f32
    %56 = vector.broadcast %cst_26 : f32 to vector<256x256xf32>
    %57 = arith.mulf %56, %55 : vector<256x256xf32>
    %58 = arith.maximumf %55, %57 : vector<256x256xf32>
    %59 = arith.truncf %58 : vector<256x256xf32> to vector<256x256xbf16>
    %c0_27 = arith.constant 0 : index
    %c0_28 = arith.constant 0 : index
    %60 = vector.load %arg6[%c0_27, %c0_28] : memref<256x256xbf16, #tpu.memory_space<vmem>>, vector<256x256xbf16>
    tpu.vector_store %arg6[%c0_27, %c0_28], %59 {strides = array<i32>} : memref<256x256xbf16, #tpu.memory_space<vmem>>, vector<256x256xbf16>,
    return
  }
  func.func @transform_0(%arg0: i32) -> (i32, i32) {
    %c0_i32 = arith.constant 0 : i32
    %c0_i32_0 = arith.constant 0 : i32
    return %arg0, %c0_i32 : i32, i32
  }
  func.func @transform_1(%arg0: i32) -> (i32, i32) {
    %c0_i32 = arith.constant 0 : i32
    %c0_i32_0 = arith.constant 0 : i32
    %c0_i32_1 = arith.constant 0 : i32
    return %c0_i32, %c0_i32_0 : i32, i32
  }
  func.func @transform_2(%arg0: i32) -> (i32, i32, i32) {
    %c0_i32 = arith.constant 0 : i32
    %c0_i32_0 = arith.constant 0 : i32
    %c0_i32_1 = arith.constant 0 : i32
    %c0_i32_2 = arith.constant 0 : i32
    return %c0_i32, %c0_i32_0, %c0_i32_1 : i32, i32, i32
  }
  func.func @transform_3(%arg0: i32) -> (i32, i32) {
    %c0_i32 = arith.constant 0 : i32
    %c0_i32_0 = arith.constant 0 : i32
    %c0_i32_1 = arith.constant 0 : i32
    return %c0_i32, %c0_i32_0 : i32, i32
  }
  func.func @transform_4(%arg0: i32) -> (i32, i32) {
    %c0_i32 = arith.constant 0 : i32
    %c0_i32_0 = arith.constant 0 : i32
    %c0_i32_1 = arith.constant 0 : i32
    return %c0_i32, %c0_i32_0 : i32, i32
  }
  func.func @transform_5(%arg0: i32) -> (i32, i32) {
    %c0_i32 = arith.constant 0 : i32
    %c0_i32_0 = arith.constant 0 : i32
    return %arg0, %c0_i32 : i32, i32
  }
}

</mosaic_0001>

<bundles_post_ra>
// kernel: autoencoder_forward.1
= control target key start
LH: loop header
LB: loop body
LE: loop exit
PB: predicated region body
PF: predicated region fallthrough
CT: control target
= control target key end

     0   :  { %10 = vsyncpa [#allocation3], 0  ;;  %s4621_s0 = inlined_call_operand.hbm [shape: bf16[512,256], index: 0, kind: input, shape index: {}]   ;;  %s4622_s1 = inlined_call_operand.hbm [shape: bf16[256,128], index: 1, kind: input, shape index: {}]   ;;  %s4623_s2 = inlined_call_operand.hbm [shape: bf16[4,128,128], index: 2, kind: input, shape index: {}]   ;;  %s4624_s3 = inlined_call_operand.hbm [shape: bf16[128,256], index: 3, kind: input, shape index: {}]   ;;  %s4625_s4 = inlined_call_operand.hbm [shape: f32[8,256], index: 4, kind: input, shape index: {}]   ;;  %s4626_s5 = inlined_call_operand.hbm [shape: bf16[512,256], index: 5, kind: output, shape index: {}]  }
   0x1   :  { %12 = vsyncpa [#allocation3 + $0x1], 0 }
   0x2   :  { %13 = vsyncpa [#allocation6], 0 }
   0x3   :  { %14 = vsyncpa [#allocation9], 0 }
   0x4   :  { %15 = vsyncpa [#allocation4], 0 }
   0x5   :  { %17 = vsyncpa [#allocation4 + $0x1], 0  ;;  %s3964_s18 = smov 0   ;;  %s3966_s19 = smov 0  }
   0x6   :  { %s3968_s20 = smov 0   ;;  %s3970_s21 = smov 0  }
   0x7 LB: > { %s3985_s22 = sadd.s32 4294967295, %s3919_s21   ;;  %s2884_s23 = sadd.s32 4294967294, %s3919_s21   ;;  %s3919_s21 = sphi %s3970_s21, %s4651_s21   ;;  %s3915_s20 = sphi %s3968_s20, %s4650_s20   ;;  %s3911_s19 = sphi %s3966_s19, %s4649_s19   ;;  %s3907_s18 = sphi %s3964_s18, %s4648_s18  }
   0x8   : > { %p43_p0 = scmp.ne.s32.totalorder %s3911_s19, %s3907_s18  ;;  %p4627_p1 = scmp.eq.s32.totalorder %s3985_s22, 0 }
   0x9   : > { %p157_p3 = scmp.eq.s32.totalorder %s2884_s23, 1  ;;  %p2885_p5 = scmp.ge.s32.totalorder %s3919_s21, 1 }
   0xa   : > { %p3994_p4 = por %p4627_p1, %p43_p0  ;;  %p164_p7 = scmp.lt.s32.totalorder %s3919_s21, 3 }
   0xb   : > { %p3999_p6 = por %p157_p3, %p43_p0  ;;  %s3921_s27 = smov [#allocation5]  }
   0xc   : > { %s4631_s24 = scalar_select %p3994_p4, 1, 0 }
   0xd   : > { %s4632_s25 = scalar_select %p3999_p6, 1, 0 }
   0xe   : > { %p4004_p8 = pnand %p2885_p5, %p164_p7  ;;  %s176_s28 = sshll.u32 %s3921_s27, 4  ;;  %s4008_s28 = int_to_ptr.vmem [resolvable:$true] %s176_s28 }
   0xf   : > { %s3922_s30 = smov [#allocation8]   ;;  %s3703_s9 = scalar_lea.hbm %s4622_s1, 2048 }
  0x10   : > { %s4633_s26 = scalar_select %p4004_p8, 1, 0 }
  0x11   : > { %p3508_p9 = pneg %p4004_p8  ;;  %s202_s6 = sshll.u32 %s3922_s30, 4  ;;  %s4019_s6 = int_to_ptr.vmem [resolvable:$true] %s202_s6 }
  0x12   : > { %p3704_p12 = scmp.ne.s32.totalorder %s4622_s1, %s3703_s9  ;;  %p3710_p5 = scmp.lt.u32.totalorder %s3703_s9, %s4622_s1 }
  0x13   : > { %p4015_p11 = pnand %p3508_p9, %p4627_p1 }
  0x15   : > { %p4029_p13 = pneg %p4015_p11 }
  0x17   : > { %p3706_p0 = pnand %p4029_p13, %p3704_p12 }
  0x19   : > { %p3707_p3 = pneg %p3706_p0 }
  0x1b   : > { %p3712_p7 = pnand %p3710_p5, %p3707_p3 }
  0x1d   : > { %3715 = shalt.err (!%p3712_p7)
}
  0x1e   : > { %s3716_s15 = scalar_lea.vmem %s4008_s28, 2048  ;;  %p3724_p2 = scmp.lt.s32.totalorder %s4008_s28, %s4008_s28 }
  0x1f   : > { %p3717_p9 = scmp.ne.s32.totalorder %s4008_s28, %s3716_s15  ;;  %p3725_p6 = scmp.lt.s32.totalorder %s3716_s15, %s3716_s15 }
  0x21   : > { %p3719_p10 = pnand %p3717_p9, %p4029_p13  ;;  %p3726_p12 = por %p3725_p6, %p3724_p2 }
  0x23   : > { %p3720_p1 = pneg %p3719_p10 }
  0x25   : > { %p3727_p0 = pnand %p3726_p12, %p3720_p1 }
  0x27   : > { %3730 = shalt.err (!%p3727_p0)
}
  0x28   : > { %s4628_s16 = smov 64   ;;  %s3924_s17 = smov 4  }
  0x29   : > { %3511 = dma.hbm_to_vmem [thread:$0]  (!%p4015_p11), %s4622_s1, 2048, %s4008_s28, [#allocation6], %s4628_s16, %s4628_s16, %s3924_s17  }
  0x2a   : > { %s3731_s8 = scalar_lea.hbm %s4624_s3, 2048 }
  0x2b   : > { %p3732_p1 = scmp.ne.s32.totalorder %s4624_s3, %s3731_s8  ;;  %p3738_p10 = scmp.lt.u32.totalorder %s3731_s8, %s4624_s3 }
  0x2d   : > { %p3734_p2 = pnand %p3732_p1, %p4029_p13 }
  0x2f   : > { %p3735_p6 = pneg %p3734_p2 }
  0x31   : > { %p3740_p3 = pnand %p3738_p10, %p3735_p6 }
  0x33   : > { %3743 = shalt.err (!%p3740_p3)
}
  0x34   : > { %s3744_s28 = scalar_lea.vmem %s4019_s6, 2048  ;;  %p3752_p12 = scmp.lt.s32.totalorder %s4019_s6, %s4019_s6 }
  0x35   : > { %p3745_p5 = scmp.ne.s32.totalorder %s4019_s6, %s3744_s28  ;;  %p3753_p0 = scmp.lt.s32.totalorder %s3744_s28, %s3744_s28 }
  0x37   : > { %p3747_p7 = pnand %p3745_p5, %p4029_p13  ;;  %p3754_p1 = por %p3753_p0, %p3752_p12 }
  0x39   : > { %p3748_p9 = pneg %p3747_p7 }
  0x3b   : > { %p3755_p2 = pnand %p3754_p1, %p3748_p9 }
  0x3d   : > { %3758 = shalt.err (!%p3755_p2)
}
  0x3e   : > { %s3925_s14 = smov 128   ;;  %s3926_s15 = smov 8  }
  0x3f   : > { %3517 = dma.hbm_to_vmem [thread:$0]  (!%p4015_p11), %s4624_s3, 2048, %s4019_s6, [#allocation9], %s3925_s14, %s3925_s14, %s3926_s15  }
  0x40   : > { %s3927_s30 = smov [#allocation7]   ;;  %s3928_s8 = smov [#allocation10]  }
  0x41   : > { %s189_s7 = sshll.u32 %s3927_s30, 4  ;;  %s216_s9 = sshll.u32 %s3928_s8, 4  ;;  %s190_s7 = int_to_ptr.vmem [resolvable:$true] %s189_s7  ;;  %s4079_s9 = int_to_ptr.vmem [resolvable:$true] %s216_s9 }
  0x42   : > { %s3759_s13 = scalar_lea.hbm %s4623_s2, 4096 }
  0x43   : > { %p3760_p6 = scmp.ne.s32.totalorder %s4623_s2, %s3759_s13  ;;  %p3766_p5 = scmp.lt.u32.totalorder %s3759_s13, %s4623_s2 }
  0x45   : > { %p3762_p10 = pnand %p3760_p6, %p4029_p13 }
  0x47   : > { %p3763_p3 = pneg %p3762_p10 }
  0x49   : > { %p3768_p7 = pnand %p3766_p5, %p3763_p3 }
  0x4b   : > { %3771 = shalt.err (!%p3768_p7)
}
  0x4c   : > { %s3772_s27 = scalar_lea.vmem %s190_s7, 4096  ;;  %p3780_p1 = scmp.lt.s32.totalorder %s190_s7, %s190_s7 }
  0x4d   : > { %p3773_p9 = scmp.ne.s32.totalorder %s190_s7, %s3772_s27  ;;  %p3781_p2 = scmp.lt.s32.totalorder %s3772_s27, %s3772_s27 }
  0x4f   : > { %p3775_p12 = pnand %p3773_p9, %p4029_p13  ;;  %p3782_p4 = por %p3781_p2, %p3780_p1 }
  0x51   : > { %p3776_p0 = pneg %p3775_p12 }
  0x53   : > { %p3783_p8 = pnand %p3782_p4, %p3776_p0 }
  0x55   : > { %3786 = shalt.err (!%p3783_p8)
}
  0x56   : > { %s4636_s16 = smov 64   ;;  %s3787_s13 = scalar_lea.hbm %s4625_s4, 256 }
  0x57   : > { %3514 = dma.hbm_to_vmem [thread:$0]  (!%p4015_p11), %s4623_s2, 4096, %s190_s7, [#allocation6], %s4636_s16, %s4636_s16, %s3924_s17  }
  0x58   : > { %p3788_p6 = scmp.ne.s32.totalorder %s4625_s4, %s3787_s13  ;;  %p3794_p10 = scmp.lt.u32.totalorder %s3787_s13, %s4625_s4 }
  0x5a   : > { %p3790_p4 = pnand %p3788_p6, %p4029_p13 }
  0x5c   : > { %p3791_p8 = pneg %p3790_p4 }
  0x5e   : > { %p3796_p3 = pnand %p3794_p10, %p3791_p8 }
  0x60   : > { %3799 = shalt.err (!%p3796_p3)
}
  0x61   : > { %s3800_s17 = scalar_lea.vmem %s4079_s9, 256  ;;  %p3808_p12 = scmp.lt.s32.totalorder %s4079_s9, %s4079_s9 }
  0x62   : > { %p3801_p5 = scmp.ne.s32.totalorder %s4079_s9, %s3800_s17  ;;  %p3809_p0 = scmp.lt.s32.totalorder %s3800_s17, %s3800_s17 }
  0x64   : > { %p3803_p7 = pnand %p3801_p5, %p4029_p13  ;;  %p3810_p1 = por %p3809_p0, %p3808_p12 }
  0x66   : > { %p3804_p9 = pneg %p3803_p7 }
  0x68   : > { %p3811_p2 = pnand %p3810_p1, %p3804_p9 }
  0x6a   : > { %3814 = shalt.err (!%p3811_p2)
}
  0x6b   : > { %3520 = dma.hbm_to_vmem [thread:$0]  (!%p4015_p11), %s4625_s4, 256, %s4079_s9, [#allocation9]  }
  0x6c   : > { %s4126_s12 = sadd.s32 1, %s3919_s21   ;;  %s30_s30 = sadd.s32 1, %s3915_s20 }
  0x6d   : > { %s27_s29 = ssub.s32 %s3919_s21, %s4126_s12  ;;  %p37_p6 = scmp.ne.s32.totalorder %s3915_s20, %s3911_s19 }
  0x6e   : > { %p28_p13 = scmp.eq.s32.totalorder %s27_s29, 0  ;;  %p38_p4 = scmp.eq.s32.totalorder %s3919_s21, 0 }
  0x6f   : > { %p4637_p10 = scmp.eq.s32.totalorder %s3985_s22, 1  ;;  %p3533_p5 = scmp.lt.s32.totalorder %s3919_s21, 2 }
  0x70   : > { %s4135_s8 = scalar_select %p28_p13, %s3915_s20, %s30_s30  }
  0x71   : > { %p39_p8 = por %p38_p4, %p37_p6  ;;  %p4139_p3 = por %p4637_p10, %p37_p6 }
  0x72   : > { %s227_s11 = sand.u32 1, %s3915_s20   ;;  %s3037_s9 = sshll.u32 %s3919_s21, 12 }
  0x73   : > { %s2891_s13 = sshll.u32 %s227_s11, 8  ;;  %s4149_s6 = scalar_lea.hbm %s4621_s0, %s3037_s9 }
  0x74   : > { %s231_s27 = scalar_lea.vmem [#allocation2], %s2891_s13  ;;  %p4153_p11 = pnand %p3533_p5, %p39_p8 }
  0x75   : > { %s239_s17 = sshll.u32 %s231_s27, 4  ;;  %s4157_s16 = scalar_lea.sflag [#allocation3], %s227_s11  ;;  %s4151_s17 = int_to_ptr.vmem [resolvable:$true] %s239_s17 }
  0x76   : > { %s3815_s29 = scalar_lea.hbm %s4149_s6, 4096  ;;  %p3817_p9 = pneg %p4153_p11 }
  0x77   : > { %p3816_p7 = scmp.ne.s32.totalorder %s4149_s6, %s3815_s29  ;;  %s3820_s9 = scalar_lea.hbm %s4621_s0, 8192 }
  0x78   : > { %p3821_p1 = scmp.lt.u32.totalorder %s4149_s6, %s4621_s0  ;;  %p3822_p2 = scmp.lt.u32.totalorder %s3820_s9, %s3815_s29 }
  0x79   : > { %p3818_p12 = pnand %p3817_p9, %p3816_p7  ;;  %p3824_p6 = scmp.lt.u32.totalorder %s3815_s29, %s4149_s6 }
  0x7a   : > { %p3823_p13 = por %p3822_p2, %p3821_p1 }
  0x7b   : > { %p3819_p0 = pneg %p3818_p12 }
  0x7c   : > { %p3825_p4 = por %p3824_p6, %p3823_p13 }
  0x7e   : > { %p3826_p8 = pnand %p3825_p4, %p3819_p0 }
  0x80   : > { %3829 = shalt.err (!%p3826_p8)
}
  0x81   : > { %s3830_s11 = scalar_lea.vmem %s4151_s17, 4096  ;;  %s3929_s27 = smov [#allocation2]  }
  0x82   : > { %p3831_p10 = scmp.ne.s32.totalorder %s4151_s17, %s3830_s11  ;;  %s3835_s30 = sshll.u32 %s3929_s27, 4  ;;  %s3836_s30 = int_to_ptr.vmem [resolvable:$false] %s3835_s30 }
  0x83   : > { %s3837_s13 = scalar_lea.vmem %s3836_s30, 8192  ;;  %p3838_p12 = scmp.lt.s32.totalorder %s4151_s17, %s3836_s30 }
  0x84   : > { %p3833_p5 = pnand %p3831_p10, %p3817_p9  ;;  %p3839_p1 = scmp.lt.s32.totalorder %s3837_s13, %s3830_s11 }
  0x86   : > { %p3834_p7 = pneg %p3833_p5  ;;  %p3840_p2 = por %p3839_p1, %p3838_p12 }
  0x88   : > { %p3841_p13 = pnand %p3840_p2, %p3834_p7 }
  0x8a   : > { %3844 = shalt.err (!%p3841_p13)
}
  0x8b   : > { %3524 = dma.hbm_to_vmem [thread:$0]  (!%p4153_p11), %s4149_s6, 4096, %s4151_s17, %s4157_s16, %s3925_s14, %s3925_s14, %s3926_s15  }
  0x8c   : > { %p4640_p9 = scmp.ne.s32.totalorder %s4633_s26, 0 }
  0x8d   : > { %s4191_s29 = sand.u32 (!%p4640_p9), 1, %s3911_s19   ;;  %p4641_p0 = scmp.ne.s32.totalorder (!%p4640_p9), %s4631_s24, 0 }
  0x8e   : > { %251 = sbr.rel (%p4640_p9) target bundleno = 1676 (0x68c), region = 40  ;;  %s2896_s9 = sshll.u32 (!%p4640_p9), %s4191_s29, 8 }
  0x8f   : > { %s254_s28 = scalar_lea.sflag (!%p4640_p9), [#allocation3], %s4191_s29  ;;  %s4197_s7 = scalar_lea.vmem (!%p4640_p9), [#allocation2], %s2896_s9 }
  0x95   : > { %3890 = dma.done.wait (%p4641_p0), %s254_s28, 4096  }
  0x96   : > { %3892 = vsyncadd (%p4641_p0), %s254_s28, 4294963200  ;;  %p4642_p11 = scmp.eq.s32.totalorder %s3985_s22, 0 }
  0x98   : > { %3894 = dma.done.wait (%p4642_p11), [#allocation6], 6144   ;;  %p4643_p6 = pmov %p4642_p11 }
  0x9a   : > { %3896 = vsyncadd (%p4643_p6), [#allocation6], 4294961152  ;;  %p4644_p4 = pmov %p4643_p6 }
  0x9c   : > { %3898 = dma.done.wait (%p4644_p4), [#allocation9], 2304   ;;  %p4645_p8 = pmov %p4644_p4 }
  0x9d   : > { %v3582_v0 = vld [vmem:[#allocation5 + $0x40] sm:$0xff]   ;;  %v3584_v2 = vld [vmem:[#allocation5 + $0x48] sm:$0xff]   ;;  %v3586_v4 = vld [vmem:[#allocation5 + $0x50] sm:$0xff]   ;;  %v369_v57 = vlaneseq  ;;  %s4477_s24 = scalar_lea.vmem [#allocation11], %s2896_s9  ;;  %s3071_s26 = sshll.u32 %s3985_s22, 12 }
  0x9e   : > { %3900 = vsyncadd (%p4645_p8), [#allocation9], 4294964992  ;;  %v3583_v1 = vld [vmem:[#allocation5] sm:$0xff]   ;;  %3072 = vmatprep.subr.bf16.mxu0 %v3582_v0  ;;  %3472 = vmatprep.subr.bf16.mxu1 %v3582_v0  ;;  %v3585_v3 = vld [vmem:[#allocation5 + $0x8] sm:$0xff]   ;;  %s2773_s14 = sshll.u32 %s4477_s24, 4  ;;  %s4573_s17 = scalar_lea.hbm %s4626_s5, %s3071_s26  ;;  %s4575_s14 = int_to_ptr.vmem [resolvable:$true] %s2773_s14 }
  0x9f   : > { %3073 = vmatpush3.bf16.msra.mxu0 %v3583_v1  ;;  %3480 = vmatpush3.bf16.msra.mxu1 %v3583_v1  ;;  %v3587_v5 = vld [vmem:[#allocation5 + $0x10] sm:$0xff]   ;;  %v3588_v6 = vld [vmem:[#allocation5 + $0x58] sm:$0xff]   ;;  %v3590_v8 = vld [vmem:[#allocation5 + $0x60] sm:$0xff]   ;;  %v4246_v58 = vshrl.u32 %v369_v57, 7  ;;  %s2759_s16 = scalar_lea.sflag [#allocation4], %s4191_s29  ;;  %s3845_s23 = scalar_lea.vmem %s4575_s14, 4096 }
  0xa0   : > { %3074 = vmatprep.subr.bf16.mxu0 %v3584_v2  ;;  %3473 = vmatprep.subr.bf16.mxu1 %v3584_v2  ;;  %v3589_v7 = vld [vmem:[#allocation5 + $0x18] sm:$0xff]   ;;  %v3591_v9 = vld [vmem:[#allocation5 + $0x20] sm:$0xff]   ;;  %v3592_v10 = vld [vmem:[#allocation5 + $0x68] sm:$0xff]   ;;  %p3846_p10 = scmp.ne.s32.totalorder %s4575_s14, %s3845_s23  ;;  %s3931_s22 = smov [#allocation11]  }
  0xa1   : > { %v3600_v11 = vld [vmem:[%s4197_s7 + $0x4] ss:$8 sps:$4 sm:$0xff]   ;;  %v3594_v13 = vld [vmem:[#allocation5 + $0x70] sm:$0xff]   ;;  %v3596_v16 = vld [vmem:[#allocation5 + $0x78] sm:$0xff]   ;;  %v371_v59 = vsub.s32 0, %v4246_v58  ;;  %s3849_s11 = sshll.u32 %s3931_s22, 4  ;;  %s3850_s11 = int_to_ptr.vmem [resolvable:$false] %s3849_s11 }
  0xa2   : > { %v3593_v12 = vld [vmem:[#allocation5 + $0x28] sm:$0xff]   ;;  %661 = vmatprep.mubr.bf16.mxu0 %v3600_v11  ;;  %v3595_v14 = vld [vmem:[#allocation5 + $0x30] sm:$0xff]   ;;  %v3597_v17 = vld [vmem:[#allocation5 + $0x38] sm:$0xff]   ;;  %p3847_p5 = pnand %p3846_p10, %p4139_p3  ;;  %s3851_s27 = scalar_lea.vmem %s3850_s11, 8192 }
  0xa3   : > { %3075 = vmatpush3.bf16.msra.mxu0 %v3585_v3  ;;  %3481 = vmatpush3.bf16.msra.mxu1 %v3585_v3  ;;  %v3615_v15 = vld [vmem:[%s4197_s7 + $0x84] ss:$8 sps:$4 sm:$0xff]   ;;  %v3598_v18 = vld [vmem:[%s4197_s7] ss:$8 sps:$4 sm:$0xff]   ;;  %v3601_v19 = vld [vmem:[%s4197_s7 + $0x14] ss:$8 sps:$4 sm:$0xff]   ;;  %p3852_p12 = scmp.lt.s32.totalorder %s4575_s14, %s3850_s11  ;;  %p3853_p1 = scmp.lt.s32.totalorder %s3851_s27, %s3845_s23 }
  0xa4   : > { %3076 = vmatprep.subr.bf16.mxu0 %v3586_v4  ;;  %3474 = vmatprep.subr.bf16.mxu1 %v3586_v4  ;;  %v3613_v20 = vld [vmem:[%s4197_s7 + $0x80] ss:$8 sps:$4 sm:$0xff]   ;;  %v3619_v21 = vld [vmem:[%s4197_s7 + $0x94] ss:$8 sps:$4 sm:$0xff]   ;;  %v3603_v22 = vld [vmem:[%s4197_s7 + $0x10] ss:$8 sps:$4 sm:$0xff]   ;;  %p3848_p7 = pneg %p3847_p5 }
  0xa5   : > { %725 = vmatprep.mubr.bf16.mxu1 %v3615_v15  ;;  %v3604_v23 = vld [vmem:[%s4197_s7 + $0x24] ss:$8 sps:$4 sm:$0xff]   ;;  %v3621_v24 = vld [vmem:[%s4197_s7 + $0x90] ss:$8 sps:$4 sm:$0xff]   ;;  %v3606_v29 = vld [vmem:[%s4197_s7 + $0x20] ss:$8 sps:$4 sm:$0xff]   ;;  %p3854_p2 = por %p3853_p1, %p3852_p12 }
  0xa6   : > { %v3646_v25 = vld [vmem:[#allocation7] sm:$0xff]   ;;  %v3647_v26 = vld [vmem:[#allocation7 + $0x8] sm:$0xff]   ;;  %v3648_v28 = vld [vmem:[#allocation7 + $0x10] sm:$0xff]  }
  0xa7   : > { %3077 = vmatpush3.bf16.msra.mxu0 %v3587_v5  ;;  %3482 = vmatpush3.bf16.msra.mxu1 %v3587_v5  ;;  %v3625_v27 = vld [vmem:[%s4197_s7 + $0xa4] ss:$8 sps:$4 sm:$0xff]   ;;  %v3649_v30 = vld [vmem:[#allocation7 + $0x18] sm:$0xff]   ;;  %v3627_v32 = vld [vmem:[%s4197_s7 + $0xa0] ss:$8 sps:$4 sm:$0xff]   ;;  %p3855_p13 = pnand %p3854_p2, %p3848_p7 }
  0xa8   : > { %3078 = vmatprep.subr.bf16.mxu0 %v3588_v6  ;;  %3475 = vmatprep.subr.bf16.mxu1 %v3588_v6  ;;  %v3607_v31 = vld [vmem:[%s4197_s7 + $0x34] ss:$8 sps:$4 sm:$0xff]   ;;  %v3650_v34 = vld [vmem:[#allocation7 + $0x20] sm:$0xff]   ;;  %v3609_v35 = vld [vmem:[%s4197_s7 + $0x30] ss:$8 sps:$4 sm:$0xff]  }
  0xa9   : > { %v3631_v33 = vld [vmem:[%s4197_s7 + $0xb4] ss:$8 sps:$4 sm:$0xff]   ;;  %v3651_v36 = vld [vmem:[#allocation7 + $0x28] sm:$0xff]   ;;  %v3633_v38 = vld [vmem:[%s4197_s7 + $0xb0] ss:$8 sps:$4 sm:$0xff]  }
  0xaa   : > { %v3610_v37 = vld [vmem:[%s4197_s7 + $0x44] ss:$8 sps:$4 sm:$0xff]   ;;  %v3612_v40 = vld [vmem:[%s4197_s7 + $0x40] ss:$8 sps:$4 sm:$0xff]   ;;  %v3616_v41 = vld [vmem:[%s4197_s7 + $0x54] ss:$8 sps:$4 sm:$0xff]  }
  0xab   : > { %3079 = vmatpush3.bf16.msra.mxu0 %v3589_v7  ;;  %3483 = vmatpush3.bf16.msra.mxu1 %v3589_v7  ;;  %v3634_v39 = vld [vmem:[%s4197_s7 + $0xc4] ss:$8 sps:$4 sm:$0xff]   ;;  %v3636_v42 = vld [vmem:[%s4197_s7 + $0xc0] ss:$8 sps:$4 sm:$0xff]   ;;  %v3637_v43 = vld [vmem:[%s4197_s7 + $0xd4] ss:$8 sps:$4 sm:$0xff]  }
  0xac   : > { %3080 = vmatprep.subr.bf16.mxu0 %v3590_v8  ;;  %3476 = vmatprep.subr.bf16.mxu1 %v3590_v8  ;;  %v3618_v44 = vld [vmem:[%s4197_s7 + $0x50] ss:$8 sps:$4 sm:$0xff]   ;;  %v3622_v45 = vld [vmem:[%s4197_s7 + $0x64] ss:$8 sps:$4 sm:$0xff]   ;;  %v3624_v48 = vld [vmem:[%s4197_s7 + $0x60] ss:$8 sps:$4 sm:$0xff]  }
  0xad   : > { %v3639_v46 = vld [vmem:[%s4197_s7 + $0xd0] ss:$8 sps:$4 sm:$0xff]   ;;  %v3640_v47 = vld [vmem:[%s4197_s7 + $0xe4] ss:$8 sps:$4 sm:$0xff]   ;;  %v3628_v49 = vld [vmem:[%s4197_s7 + $0x74] ss:$8 sps:$4 sm:$0xff]  }
  0xae   : > { %v3642_v50 = vld [vmem:[%s4197_s7 + $0xe0] ss:$8 sps:$4 sm:$0xff]   ;;  %v3643_v51 = vld [vmem:[%s4197_s7 + $0xf4] ss:$8 sps:$4 sm:$0xff]   ;;  %v3630_v52 = vld [vmem:[%s4197_s7 + $0x70] ss:$8 sps:$4 sm:$0xff]  }
  0xaf   : > { %3081 = vmatpush3.bf16.msra.mxu0 %v3591_v9  ;;  %3484 = vmatpush3.bf16.msra.mxu1 %v3591_v9  ;;  %v3645_v53 = vld [vmem:[%s4197_s7 + $0xf0] ss:$8 sps:$4 sm:$0xff]   ;;  %v4243_v56 = vld [vmem:[#allocation7 + $0x40] sm:$0xff]  }
  0xb0   : > { %3082 = vmatprep.subr.bf16.mxu0 %v3592_v10  ;;  %3477 = vmatprep.subr.bf16.mxu1 %v3592_v10  ;;  %v3652_v54 = vld [vmem:[#allocation7 + $0x30] sm:$0xff]   ;;  %v3653_v55 = vld [vmem:[#allocation7 + $0x38] sm:$0xff]   ;;  %v4249_v60 = vld [vmem:[#allocation10] sm:$0xff] }
  0xb1   : > { %v4252_v62 = vrot.slane %v4249_v60, %v371_v59 }
  0xb3   : > { %3083 = vmatpush3.bf16.msra.mxu0 %v3593_v12  ;;  %3485 = vmatpush3.bf16.msra.mxu1 %v3593_v12 }
  0xb4   : > { %3084 = vmatprep.subr.bf16.mxu0 %v3594_v13  ;;  %3478 = vmatprep.subr.bf16.mxu1 %v3594_v13 }
  0xb7   : > { %3085 = vmatpush3.bf16.msra.mxu0 %v3595_v14  ;;  %3486 = vmatpush3.bf16.msra.mxu1 %v3595_v14 }
  0xb8   : > { %3086 = vmatprep.subr.bf16.mxu0 %v3596_v16  ;;  %3479 = vmatprep.subr.bf16.mxu1 %v3596_v16 }
  0xbb   : > { %3087 = vmatpush3.bf16.msra.mxu0 %v3597_v17  ;;  %3487 = vmatpush3.bf16.msra.mxu1 %v3597_v17 }
  0xbc   : > { %3280 = vmatprep.subr.bf16.mxu1 %v3646_v25 }
  0xbe   : > { %662 = vmatmul.mubr.bf16.vlgmr.msra.gmra.mrb[0].mxu0 %v3598_v18  ;;  %726 = vmatmul.mubr.bf16.vlgmr.msra.gmra.mrb[0].mxu1 %v3613_v20 }
  0xbf   : > { %669 = vmatprep.mubr.bf16.mxu0 %v3601_v19  ;;  %733 = vmatprep.mubr.bf16.mxu1 %v3619_v21 }
  0xc0   : > { %3281 = vmatpush3.bf16.msra.mxu1 %v3646_v25 }
  0xc1   : > { %3282 = vmatprep.subr.bf16.mxu1 %v3647_v26 }
  0xc4   : > { %3283 = vmatpush3.bf16.msra.mxu1 %v3647_v26 }
  0xc5   : > { %3284 = vmatprep.subr.bf16.mxu1 %v3648_v28 }
  0xc6   : > { %670 = vmatmul.mubr.bf16.gmra.mrb[4].mxu0 %v3603_v22  ;;  %734 = vmatmul.mubr.bf16.gmra.mrb[4].mxu1 %v3621_v24 }
  0xc7   : > { %677 = vmatprep.mubr.bf16.mxu0 %v3604_v23  ;;  %741 = vmatprep.mubr.bf16.mxu1 %v3625_v27 }
  0xc8   : > { %3285 = vmatpush3.bf16.msra.mxu1 %v3648_v28 }
  0xc9   : > { %3286 = vmatprep.subr.bf16.mxu1 %v3649_v30 }
  0xcc   : > { %3287 = vmatpush3.bf16.msra.mxu1 %v3649_v30 }
  0xcd   : > { %3288 = vmatprep.subr.bf16.mxu1 %v3650_v34 }
  0xce   : > { %678 = vmatmul.mubr.bf16.gmra.mrb[8].mxu0 %v3606_v29  ;;  %742 = vmatmul.mubr.bf16.gmra.mrb[8].mxu1 %v3627_v32 }
  0xcf   : > { %685 = vmatprep.mubr.bf16.mxu0 %v3607_v31  ;;  %749 = vmatprep.mubr.bf16.mxu1 %v3631_v33 }
  0xd0   : > { %3289 = vmatpush3.bf16.msra.mxu1 %v3650_v34 }
  0xd1   : > { %3290 = vmatprep.subr.bf16.mxu1 %v3651_v36 }
  0xd4   : > { %3291 = vmatpush3.bf16.msra.mxu1 %v3651_v36 }
  0xd5   : > { %3292 = vmatprep.subr.bf16.mxu1 %v3652_v54 }
  0xd6   : > { %686 = vmatmul.mubr.bf16.gmra.mrb[12].mxu0 %v3609_v35  ;;  %750 = vmatmul.mubr.bf16.gmra.mrb[12].mxu1 %v3633_v38 }
  0xd7   : > { %693 = vmatprep.mubr.bf16.mxu0 %v3610_v37  ;;  %757 = vmatprep.mubr.bf16.mxu1 %v3634_v39 }
  0xd8   : > { %3293 = vmatpush3.bf16.msra.mxu1 %v3652_v54 }
  0xd9   : > { %3294 = vmatprep.subr.bf16.mxu1 %v3653_v55 }
  0xdc   : > { %3295 = vmatpush3.bf16.msra.mxu1 %v3653_v55 }
  0xdd   : > { %3328 = vmatprep.subr.bf16.mxu1 %v4243_v56 }
  0xde   : > { %694 = vmatmul.mubr.bf16.gmra.mrb[16].mxu0 %v3612_v40  ;;  %758 = vmatmul.mubr.bf16.gmra.mrb[16].mxu1 %v3636_v42 }
  0xdf   : > { %701 = vmatprep.mubr.bf16.mxu0 %v3616_v41  ;;  %765 = vmatprep.mubr.bf16.mxu1 %v3637_v43 }
  0xe6   : > { %702 = vmatmul.mubr.bf16.gmra.mrb[20].mxu0 %v3618_v44  ;;  %766 = vmatmul.mubr.bf16.gmra.mrb[20].mxu1 %v3639_v46 }
  0xe7   : > { %709 = vmatprep.mubr.bf16.mxu0 %v3622_v45  ;;  %773 = vmatprep.mubr.bf16.mxu1 %v3640_v47 }
  0xee   : > { %710 = vmatmul.mubr.bf16.gmra.mrb[24].mxu0 %v3624_v48  ;;  %774 = vmatmul.mubr.bf16.gmra.mrb[24].mxu1 %v3642_v50 }
  0xef   : > { %717 = vmatprep.mubr.bf16.mxu0 %v3628_v49  ;;  %781 = vmatprep.mubr.bf16.mxu1 %v3643_v51 }
  0xf6   : > { %718 = vmatmul.mubr.bf16.gmra.mrb[28].mxu0 %v3630_v52  ;;  %782 = vmatmul.mubr.bf16.gmra.mrb[28].mxu1 %v3645_v53 }
 0x191   : > { %v3088_v61 = vpop.f32.mrb[0].mxu0  ;;  %v3136_v0 = vpop.f32.mrb[0].mxu1 }
 0x192   : > { %v3089_v63 = vpop.f32.mrb[1].mxu0  ;;  %v3137_v3 = vpop.f32.mrb[1].mxu1 }
 0x193   : > { %v3090_v1 = vadd.f32 %v3089_v63, %v3088_v61  ;;  %v3091_v2 = vpop.f32.mrb[2].mxu0  ;;  %v3138_v5 = vadd.f32 %v3137_v3, %v3136_v0  ;;  %v3139_v6 = vpop.f32.mrb[2].mxu1 }
 0x194   : > { %v3092_v4 = vpop.f32.mrb[3].mxu0  ;;  %v3140_v9 = vpop.f32.mrb[3].mxu1 }
 0x195   : > { %v664_v7 = vadd.f32 %v3090_v1, %v4252_v62  ;;  %v3093_v8 = vadd.f32 %v3092_v4, %v3091_v2  ;;  %v728_v10 = vadd.f32 %v3138_v5, %v4252_v62  ;;  %v3141_v11 = vadd.f32 %v3140_v9, %v3139_v6  ;;  %v3655_v1 = vld [vmem:[#allocation7 + $0x48] sm:$0xff]  }
 0x197   : > { %v790_v12 = vmul.f32 0.01, %v664_v7  ;;  %v667_v13 = vadd.f32 %v3093_v8, %v4252_v62  ;;  %v806_v14 = vmul.f32 0.01, %v728_v10  ;;  %v731_v15 = vadd.f32 %v3141_v11, %v4252_v62  ;;  %v3656_v11 = vld [vmem:[#allocation7 + $0x50] sm:$0xff]  }
 0x199   : > { %v791_v16 = vmul.f32 0.01, %v667_v13  ;;  %v3094_v17 = vpop.f32.mrb[4].mxu0  ;;  %v838_v19 = vmax.f32 %v728_v10, %v806_v14  ;;  %v807_v20 = vmul.f32 0.01, %v731_v15  ;;  %v3142_v21 = vpop.f32.mrb[4].mxu1  ;;  %v822_v22 = vmax.f32 %v664_v7, %v790_v12 }
 0x19a   : > { %v3095_v18 = vpop.f32.mrb[5].mxu0  ;;  %v3143_v26 = vpop.f32.mrb[5].mxu1 }
 0x19b   : > { %v823_v23 = vmax.f32 %v667_v13, %v791_v16  ;;  %v3096_v24 = vadd.f32 %v3095_v18, %v3094_v17  ;;  %v3097_v25 = vpop.f32.mrb[6].mxu0  ;;  %v839_v28 = vmax.f32 %v731_v15, %v807_v20  ;;  %v3144_v29 = vadd.f32 %v3143_v26, %v3142_v21  ;;  %v3145_v30 = vpop.f32.mrb[6].mxu1 }
 0x19c   : > { %v3098_v27 = vpop.f32.mrb[7].mxu0  ;;  %v3146_v34 = vpop.f32.mrb[7].mxu1 }
 0x19d   : > { %v672_v31 = vadd.f32 %v3096_v24, %v4252_v62  ;;  %v3099_v32 = vadd.f32 %v3098_v27, %v3097_v25  ;;  %v854_v33 = vpack.c.bf16 %v823_v23, %v822_v22  ;;  %v736_v35 = vadd.f32 %v3144_v29, %v4252_v62 }
 0x19e   : > { %v3147_v36 = vadd.f32 %v3146_v34, %v3145_v30  ;;  %v4260_v37 = vpack.c.bf16 %v839_v28, %v838_v19  ;;  %v3657_v28 = vld [vmem:[#allocation7 + $0x58] sm:$0xff]  }
 0x19f   : > { %v792_v38 = vmul.f32 0.01, %v672_v31  ;;  %v675_v39 = vadd.f32 %v3099_v32, %v4252_v62  ;;  %3296 = vmatprep.mubr.bf16.mxu1 %v854_v33  ;;  %v808_v40 = vmul.f32 0.01, %v736_v35 }
 0x1a0   : > { %v739_v41 = vadd.f32 %v3147_v36, %v4252_v62 }
 0x1a1   : > { %v793_v42 = vmul.f32 0.01, %v675_v39  ;;  %v3100_v43 = vpop.f32.mrb[8].mxu0  ;;  %v840_v45 = vmax.f32 %v736_v35, %v808_v40  ;;  %v3148_v47 = vpop.f32.mrb[8].mxu1  ;;  %v824_v48 = vmax.f32 %v672_v31, %v792_v38 }
 0x1a2   : > { %v3101_v44 = vpop.f32.mrb[9].mxu0  ;;  %v809_v46 = vmul.f32 0.01, %v739_v41  ;;  %v3149_v52 = vpop.f32.mrb[9].mxu1 }
 0x1a3   : > { %v825_v49 = vmax.f32 %v675_v39, %v793_v42  ;;  %v3102_v50 = vadd.f32 %v3101_v44, %v3100_v43  ;;  %v3103_v51 = vpop.f32.mrb[10].mxu0  ;;  %v3150_v55 = vadd.f32 %v3149_v52, %v3148_v47  ;;  %v3151_v57 = vpop.f32.mrb[10].mxu1  ;;  %v3658_v39 = vld [vmem:[#allocation7 + $0x60] sm:$0xff]  }
 0x1a4   : > { %v3104_v53 = vpop.f32.mrb[11].mxu0  ;;  %v841_v54 = vmax.f32 %v739_v41, %v809_v46  ;;  %v3152_v0 = vpop.f32.mrb[11].mxu1 }
 0x1a5   : > { %v855_v59 = vpack.c.bf16 %v825_v49, %v824_v48  ;;  %v680_v61 = vadd.f32 %v3102_v50, %v4252_v62  ;;  %v3105_v63 = vadd.f32 %v3104_v53, %v3103_v51  ;;  %v744_v2 = vadd.f32 %v3150_v55, %v4252_v62 }
 0x1a6   : > { %v3153_v3 = vadd.f32 %v3152_v0, %v3151_v57  ;;  %v4266_v4 = vpack.c.bf16 %v841_v54, %v840_v45 }
 0x1a7   : > { %v794_v5 = vmul.f32 0.01, %v680_v61  ;;  %v683_v6 = vadd.f32 %v3105_v63, %v4252_v62  ;;  %3297 = vmatmul.mubr.bf16.vlgmr.msra.gmra.mrb[32].mxu1 %v855_v59  ;;  %v810_v7 = vmul.f32 0.01, %v744_v2  ;;  %v3659_v59 = vld [vmem:[#allocation7 + $0x68] sm:$0xff]  }
 0x1a8   : > { %v747_v8 = vadd.f32 %v3153_v3, %v4252_v62  ;;  %3329 = vmatpush3.bf16.msra.mxu1 %v4243_v56 }
 0x1a9   : > { %v795_v9 = vmul.f32 0.01, %v683_v6  ;;  %v3106_v10 = vpop.f32.mrb[12].mxu0  ;;  %3330 = vmatprep.subr.bf16.mxu1 %v3655_v1  ;;  %v842_v13 = vmax.f32 %v744_v2, %v810_v7  ;;  %v3154_v15 = vpop.f32.mrb[12].mxu1  ;;  %v826_v16 = vmax.f32 %v680_v61, %v794_v5 }
 0x1aa   : > { %v3107_v12 = vpop.f32.mrb[13].mxu0  ;;  %v811_v14 = vmul.f32 0.01, %v747_v8  ;;  %v3155_v20 = vpop.f32.mrb[13].mxu1 }
 0x1ab   : > { %v827_v17 = vmax.f32 %v683_v6, %v795_v9  ;;  %v3108_v18 = vadd.f32 %v3107_v12, %v3106_v10  ;;  %v3109_v19 = vpop.f32.mrb[14].mxu0  ;;  %v3156_v23 = vadd.f32 %v3155_v20, %v3154_v15  ;;  %v3157_v24 = vpop.f32.mrb[14].mxu1 }
 0x1ac   : > { %v3110_v21 = vpop.f32.mrb[15].mxu0  ;;  %v843_v22 = vmax.f32 %v747_v8, %v811_v14  ;;  %3331 = vmatpush3.bf16.msra.mxu1 %v3655_v1  ;;  %v3158_v27 = vpop.f32.mrb[15].mxu1  ;;  %v3660_v8 = vld [vmem:[#allocation7 + $0x70] sm:$0xff]  }
 0x1ad   : > { %v688_v56 = vadd.f32 %v3108_v18, %v4252_v62  ;;  %v3111_v25 = vadd.f32 %v3110_v21, %v3109_v19  ;;  %v856_v26 = vpack.c.bf16 %v827_v17, %v826_v16  ;;  %3332 = vmatprep.subr.bf16.mxu1 %v3656_v11  ;;  %v752_v29 = vadd.f32 %v3156_v23, %v4252_v62 }
 0x1ae   : > { %v3159_v30 = vadd.f32 %v3158_v27, %v3157_v24  ;;  %v4273_v31 = vpack.c.bf16 %v843_v22, %v842_v13 }
 0x1af   : > { %v796_v32 = vmul.f32 0.01, %v688_v56  ;;  %v691_v33 = vadd.f32 %v3111_v25, %v4252_v62  ;;  %3300 = vmatprep.mubr.bf16.mxu1 %v856_v26  ;;  %v812_v34 = vmul.f32 0.01, %v752_v29 }
 0x1b0   : > { %v755_v35 = vadd.f32 %v3159_v30, %v4252_v62  ;;  %3333 = vmatpush3.bf16.msra.mxu1 %v3656_v11 }
 0x1b1   : > { %v797_v36 = vmul.f32 0.01, %v691_v33  ;;  %v3112_v38 = vpop.f32.mrb[16].mxu0  ;;  %3334 = vmatprep.subr.bf16.mxu1 %v3657_v28  ;;  %v844_v41 = vmax.f32 %v752_v29, %v812_v34  ;;  %v3160_v43 = vpop.f32.mrb[16].mxu1  ;;  %v828_v44 = vmax.f32 %v688_v56, %v796_v32 }
 0x1b2   : > { %v3113_v40 = vpop.f32.mrb[17].mxu0  ;;  %v813_v42 = vmul.f32 0.01, %v755_v35  ;;  %v3161_v48 = vpop.f32.mrb[17].mxu1 }
 0x1b3   : > { %v829_v45 = vmax.f32 %v691_v33, %v797_v36  ;;  %v3114_v46 = vadd.f32 %v3113_v40, %v3112_v38  ;;  %v3115_v47 = vpop.f32.mrb[18].mxu0  ;;  %v3162_v51 = vadd.f32 %v3161_v48, %v3160_v43  ;;  %v3163_v52 = vpop.f32.mrb[18].mxu1 }
 0x1b4   : > { %v3116_v49 = vpop.f32.mrb[19].mxu0  ;;  %v845_v50 = vmax.f32 %v755_v35, %v813_v42  ;;  %3335 = vmatpush3.bf16.msra.mxu1 %v3657_v28  ;;  %v3164_v57 = vpop.f32.mrb[19].mxu1 }
 0x1b5   : > { %v696_v53 = vadd.f32 %v3114_v46, %v4252_v62  ;;  %v3117_v54 = vadd.f32 %v3116_v49, %v3115_v47  ;;  %v857_v55 = vpack.c.bf16 %v829_v45, %v828_v44  ;;  %3336 = vmatprep.subr.bf16.mxu1 %v3658_v39  ;;  %v760_v61 = vadd.f32 %v3162_v51, %v4252_v62 }
 0x1b6   : > { %v3165_v63 = vadd.f32 %v3164_v57, %v3163_v52  ;;  %v4279_v0 = vpack.c.bf16 %v845_v50, %v844_v41 }
 0x1b7   : > { %v798_v1 = vmul.f32 0.01, %v696_v53  ;;  %v699_v2 = vadd.f32 %v3117_v54, %v4252_v62  ;;  %3301 = vmatmul.mubr.bf16.gmra.mrb[36].mxu1 %v857_v55  ;;  %v814_v3 = vmul.f32 0.01, %v760_v61 }
 0x1b8   : > { %v763_v5 = vadd.f32 %v3165_v63, %v4252_v62  ;;  %3337 = vmatpush3.bf16.msra.mxu1 %v3658_v39 }
 0x1b9   : > { %v799_v6 = vmul.f32 0.01, %v699_v2  ;;  %v3118_v7 = vpop.f32.mrb[20].mxu0  ;;  %3338 = vmatprep.subr.bf16.mxu1 %v3659_v59  ;;  %v846_v10 = vmax.f32 %v760_v61, %v814_v3  ;;  %v3166_v12 = vpop.f32.mrb[20].mxu1  ;;  %v830_v13 = vmax.f32 %v696_v53, %v798_v1 }
 0x1ba   : > { %v3119_v9 = vpop.f32.mrb[21].mxu0  ;;  %v815_v11 = vmul.f32 0.01, %v763_v5  ;;  %v3167_v17 = vpop.f32.mrb[21].mxu1 }
 0x1bb   : > { %v831_v14 = vmax.f32 %v699_v2, %v799_v6  ;;  %v3120_v15 = vadd.f32 %v3119_v9, %v3118_v7  ;;  %v3121_v16 = vpop.f32.mrb[22].mxu0  ;;  %v3168_v20 = vadd.f32 %v3167_v17, %v3166_v12  ;;  %v3169_v21 = vpop.f32.mrb[22].mxu1 }
 0x1bc   : > { %v3122_v18 = vpop.f32.mrb[23].mxu0  ;;  %v847_v19 = vmax.f32 %v763_v5, %v815_v11  ;;  %3339 = vmatpush3.bf16.msra.mxu1 %v3659_v59  ;;  %v3170_v56 = vpop.f32.mrb[23].mxu1 }
 0x1bd   : > { %v704_v22 = vadd.f32 %v3120_v15, %v4252_v62  ;;  %v3123_v23 = vadd.f32 %v3122_v18, %v3121_v16  ;;  %v858_v24 = vpack.c.bf16 %v831_v14, %v830_v13  ;;  %3340 = vmatprep.subr.bf16.mxu1 %v3660_v8  ;;  %v768_v25 = vadd.f32 %v3168_v20, %v4252_v62 }
 0x1be   : > { %v3171_v26 = vadd.f32 %v3170_v56, %v3169_v21  ;;  %v4285_v27 = vpack.c.bf16 %v847_v19, %v846_v10 }
 0x1bf   : > { %v800_v28 = vmul.f32 0.01, %v704_v22  ;;  %v707_v29 = vadd.f32 %v3123_v23, %v4252_v62  ;;  %3304 = vmatprep.mubr.bf16.mxu1 %v858_v24  ;;  %v816_v30 = vmul.f32 0.01, %v768_v25 }
 0x1c0   : > { %v771_v32 = vadd.f32 %v3171_v26, %v4252_v62  ;;  %3341 = vmatpush3.bf16.msra.mxu1 %v3660_v8 }
 0x1c1   : > { %v801_v33 = vmul.f32 0.01, %v707_v29  ;;  %v3124_v34 = vpop.f32.mrb[24].mxu0  ;;  %v848_v36 = vmax.f32 %v768_v25, %v816_v30  ;;  %v3172_v39 = vpop.f32.mrb[24].mxu1  ;;  %v832_v40 = vmax.f32 %v704_v22, %v800_v28 }
 0x1c2   : > { %v3125_v35 = vpop.f32.mrb[25].mxu0  ;;  %v817_v38 = vmul.f32 0.01, %v771_v32  ;;  %v3173_v44 = vpop.f32.mrb[25].mxu1 }
 0x1c3   : > { %v833_v41 = vmax.f32 %v707_v29, %v801_v33  ;;  %v3126_v42 = vadd.f32 %v3125_v35, %v3124_v34  ;;  %v3127_v43 = vpop.f32.mrb[26].mxu0  ;;  %v3174_v47 = vadd.f32 %v3173_v44, %v3172_v39  ;;  %v3175_v48 = vpop.f32.mrb[26].mxu1  ;;  %v3663_v39 = vld [vmem:[#allocation7 + $0x88] sm:$0xff]  }
 0x1c4   : > { %v3128_v45 = vpop.f32.mrb[27].mxu0  ;;  %v849_v46 = vmax.f32 %v771_v32, %v817_v38  ;;  %v3176_v52 = vpop.f32.mrb[27].mxu1  ;;  %v3662_v38 = vld [vmem:[#allocation7 + $0x80] sm:$0xff]  }
 0x1c5   : > { %v712_v49 = vadd.f32 %v3126_v42, %v4252_v62  ;;  %v3129_v50 = vadd.f32 %v3128_v45, %v3127_v43  ;;  %v859_v51 = vpack.c.bf16 %v833_v41, %v832_v40  ;;  %v776_v53 = vadd.f32 %v3174_v47, %v4252_v62  ;;  %3376 = vmatprep.subr.bf16.mxu0 %v3662_v38 }
 0x1c6   : > { %v3177_v54 = vadd.f32 %v3176_v52, %v3175_v48  ;;  %v867_v55 = vpack.c.bf16 %v849_v46, %v848_v36  ;;  %3377 = vmatpush3.bf16.msra.mxu0 %v3662_v38  ;;  %v888_v40 = vsub.s32 1, %v4246_v58 }
 0x1c7   : > { %v802_v57 = vmul.f32 0.01, %v712_v49  ;;  %v715_v59 = vadd.f32 %v3129_v50, %v4252_v62  ;;  %3305 = vmatmul.mubr.bf16.gmra.mrb[40].mxu1 %v859_v51  ;;  %v818_v61 = vmul.f32 0.01, %v776_v53  ;;  %3378 = vmatprep.subr.bf16.mxu0 %v3663_v39 }
 0x1c8   : > { %v779_v63 = vadd.f32 %v3177_v54, %v4252_v62  ;;  %v4304_v41 = vrot.slane %v4249_v60, %v888_v40 }
 0x1c9   : > { %v803_v1 = vmul.f32 0.01, %v715_v59  ;;  %v3130_v2 = vpop.f32.mrb[28].mxu0  ;;  %v850_v5 = vmax.f32 %v776_v53, %v818_v61  ;;  %v3178_v7 = vpop.f32.mrb[28].mxu1  ;;  %v834_v8 = vmax.f32 %v712_v49, %v802_v57 }
 0x1ca   : > { %v3131_v3 = vpop.f32.mrb[29].mxu0  ;;  %v819_v6 = vmul.f32 0.01, %v779_v63  ;;  %v3179_v12 = vpop.f32.mrb[29].mxu1  ;;  %3379 = vmatpush3.bf16.msra.mxu0 %v3663_v39 }
 0x1cb   : > { %v835_v9 = vmax.f32 %v715_v59, %v803_v1  ;;  %v3132_v10 = vadd.f32 %v3131_v3, %v3130_v2  ;;  %v3133_v11 = vpop.f32.mrb[30].mxu0  ;;  %v3180_v15 = vadd.f32 %v3179_v12, %v3178_v7  ;;  %v3181_v16 = vpop.f32.mrb[30].mxu1 }
 0x1cc   : > { %v3134_v13 = vpop.f32.mrb[31].mxu0  ;;  %v851_v14 = vmax.f32 %v779_v63, %v819_v6  ;;  %v3182_v20 = vpop.f32.mrb[31].mxu1 }
 0x1cd   : > { %v720_v17 = vadd.f32 %v3132_v10, %v4252_v62  ;;  %v3135_v18 = vadd.f32 %v3134_v13, %v3133_v11  ;;  %v860_v19 = vpack.c.bf16 %v835_v9, %v834_v8  ;;  %v784_v21 = vadd.f32 %v3180_v15, %v4252_v62 }
 0x1ce   : > { %v3183_v22 = vadd.f32 %v3182_v20, %v3181_v16  ;;  %v868_v23 = vpack.c.bf16 %v851_v14, %v850_v5 }
 0x1cf   : > { %v804_v24 = vmul.f32 0.01, %v720_v17  ;;  %v723_v56 = vadd.f32 %v3135_v18, %v4252_v62  ;;  %3308 = vmatprep.mubr.bf16.mxu1 %v860_v19  ;;  %v820_v25 = vmul.f32 0.01, %v784_v21 }
 0x1d0   : > { %v787_v26 = vadd.f32 %v3183_v22, %v4252_v62  ;;  %v3661_v62 = vld [vmem:[#allocation7 + $0x78] sm:$0xff]  }
 0x1d1   : > { %v805_v28 = vmul.f32 0.01, %v723_v56  ;;  %v852_v29 = vmax.f32 %v784_v21, %v820_v25  ;;  %v836_v32 = vmax.f32 %v720_v17, %v804_v24  ;;  %3342 = vmatprep.subr.bf16.mxu1 %v3661_v62 }
 0x1d2   : > { %v821_v30 = vmul.f32 0.01, %v787_v26  ;;  %3343 = vmatpush3.bf16.msra.mxu1 %v3661_v62 }
 0x1d3   : > { %v837_v33 = vmax.f32 %v723_v56, %v805_v28 }
 0x1d4   : > { %v853_v34 = vmax.f32 %v787_v26, %v821_v30 }
 0x1d5   : > { %v861_v35 = vpack.c.bf16 %v837_v33, %v836_v32 }
 0x1d6   : > { %v869_v36 = vpack.c.bf16 %v853_v34, %v852_v29 }
 0x1d7   : > { %3309 = vmatmul.mubr.bf16.gmra.mrb[44].mxu1 %v861_v35 }
 0x1d8   : > { %3312 = vmatprep.mubr.bf16.mxu1 %v4260_v37  ;;  %v3664_v37 = vld [vmem:[#allocation7 + $0x90] sm:$0xff]  }
 0x1d9   : > { %3380 = vmatprep.subr.bf16.mxu0 %v3664_v37 }
 0x1da   : > { %3381 = vmatpush3.bf16.msra.mxu0 %v3664_v37 }
 0x1df   : > { %3313 = vmatmul.mubr.bf16.gmra.mrb[48].mxu1 %v4266_v4  ;;  %v3665_v4 = vld [vmem:[#allocation7 + $0x98] sm:$0xff]  }
 0x1e0   : > { %3316 = vmatprep.mubr.bf16.mxu1 %v4273_v31  ;;  %3382 = vmatprep.subr.bf16.mxu0 %v3665_v4  ;;  %v3666_v31 = vld [vmem:[#allocation7 + $0xa0] sm:$0xff]  }
 0x1e1   : > { %3383 = vmatpush3.bf16.msra.mxu0 %v3665_v4 }
 0x1e2   : > { %3384 = vmatprep.subr.bf16.mxu0 %v3666_v31 }
 0x1e5   : > { %3385 = vmatpush3.bf16.msra.mxu0 %v3666_v31 }
 0x1e7   : > { %3317 = vmatmul.mubr.bf16.gmra.mrb[52].mxu1 %v4279_v0  ;;  %v3667_v0 = vld [vmem:[#allocation7 + $0xa8] sm:$0xff]  }
 0x1e8   : > { %3320 = vmatprep.mubr.bf16.mxu1 %v4285_v27  ;;  %3386 = vmatprep.subr.bf16.mxu0 %v3667_v0  ;;  %v3668_v27 = vld [vmem:[#allocation7 + $0xb0] sm:$0xff]  }
 0x1e9   : > { %3387 = vmatpush3.bf16.msra.mxu0 %v3667_v0 }
 0x1ea   : > { %3388 = vmatprep.subr.bf16.mxu0 %v3668_v27 }
 0x1ed   : > { %3389 = vmatpush3.bf16.msra.mxu0 %v3668_v27 }
 0x1ef   : > { %3321 = vmatmul.mubr.bf16.gmra.mrb[56].mxu1 %v867_v55 }
 0x1f0   : > { %3324 = vmatprep.mubr.bf16.mxu1 %v868_v23 }
 0x1f7   : > { %3325 = vmatmul.mubr.bf16.gmra.mrb[60].mxu1 %v869_v36 }
 0x27a   : > { %v3298_v42 = vpop.f32.mrb[32].mxu1 }
 0x27b   : > { %v981_v43 = vadd.f32 %v3298_v42, %v4304_v41  ;;  %v972_v44 = vpop.f32.mrb[33].mxu1 }
 0x27c   : > { %v973_v45 = vadd.f32 %v972_v44, %v4304_v41  ;;  %v3299_v46 = vpop.f32.mrb[34].mxu1 }
 0x27d   : > { %v1101_v47 = vmul.f32 0.01, %v981_v43  ;;  %v984_v48 = vadd.f32 %v3299_v46, %v4304_v41  ;;  %v975_v49 = vpop.f32.mrb[35].mxu1 }
 0x27e   : > { %v1099_v50 = vmul.f32 0.01, %v973_v45  ;;  %v976_v51 = vadd.f32 %v975_v49, %v4304_v41 }
 0x27f   : > { %v1102_v52 = vmul.f32 0.01, %v984_v48  ;;  %v1133_v54 = vmax.f32 %v981_v43, %v1101_v47 }
 0x280   : > { %v1100_v53 = vmul.f32 0.01, %v976_v51  ;;  %v1131_v57 = vmax.f32 %v973_v45, %v1099_v50 }
 0x281   : > { %v1134_v55 = vmax.f32 %v984_v48, %v1102_v52 }
 0x282   : > { %v1132_v59 = vmax.f32 %v976_v51, %v1100_v53 }
 0x283   : > { %v1164_v61 = vpack.c.bf16 %v1134_v55, %v1133_v54 }
 0x284   : > { %v1163_v63 = vpack.c.bf16 %v1132_v59, %v1131_v57 }
 0x286   : > { %3344 = vmatprep.mubr.bf16.mxu1 %v1163_v63 }
 0x287   : > { %3345 = vmatmul.mubr.bf16.vlgmr.msra.gmra.mrb[64].mxu1 %v1164_v61 }
 0x28a   : > { %v3302_v1 = vpop.f32.mrb[36].mxu1 }
 0x28b   : > { %v997_v2 = vadd.f32 %v3302_v1, %v4304_v41  ;;  %v988_v3 = vpop.f32.mrb[37].mxu1 }
 0x28c   : > { %v989_v5 = vadd.f32 %v988_v3, %v4304_v41  ;;  %v3303_v6 = vpop.f32.mrb[38].mxu1 }
 0x28d   : > { %v1105_v7 = vmul.f32 0.01, %v997_v2  ;;  %v1000_v8 = vadd.f32 %v3303_v6, %v4304_v41  ;;  %v991_v9 = vpop.f32.mrb[39].mxu1 }
 0x28e   : > { %v1103_v10 = vmul.f32 0.01, %v989_v5  ;;  %v992_v11 = vadd.f32 %v991_v9, %v4304_v41 }
 0x28f   : > { %v1106_v12 = vmul.f32 0.01, %v1000_v8  ;;  %v1137_v14 = vmax.f32 %v997_v2, %v1105_v7 }
 0x290   : > { %v1104_v13 = vmul.f32 0.01, %v992_v11  ;;  %v1135_v16 = vmax.f32 %v989_v5, %v1103_v10 }
 0x291   : > { %v1138_v15 = vmax.f32 %v1000_v8, %v1106_v12 }
 0x292   : > { %v1136_v17 = vmax.f32 %v992_v11, %v1104_v13 }
 0x293   : > { %v1166_v18 = vpack.c.bf16 %v1138_v15, %v1137_v14 }
 0x294   : > { %v1165_v19 = vpack.c.bf16 %v1136_v17, %v1135_v16 }
 0x296   : > { %3348 = vmatprep.mubr.bf16.mxu1 %v1165_v19 }
 0x297   : > { %3349 = vmatmul.mubr.bf16.gmra.mrb[68].mxu1 %v1166_v18 }
 0x29a   : > { %v3306_v20 = vpop.f32.mrb[40].mxu1 }
 0x29b   : > { %v1013_v21 = vadd.f32 %v3306_v20, %v4304_v41  ;;  %v1004_v22 = vpop.f32.mrb[41].mxu1 }
 0x29c   : > { %v1005_v23 = vadd.f32 %v1004_v22, %v4304_v41  ;;  %v3307_v24 = vpop.f32.mrb[42].mxu1 }
 0x29d   : > { %v1109_v56 = vmul.f32 0.01, %v1013_v21  ;;  %v1016_v25 = vadd.f32 %v3307_v24, %v4304_v41  ;;  %v1007_v26 = vpop.f32.mrb[43].mxu1 }
 0x29e   : > { %v1107_v28 = vmul.f32 0.01, %v1005_v23  ;;  %v1008_v29 = vadd.f32 %v1007_v26, %v4304_v41 }
 0x29f   : > { %v1110_v30 = vmul.f32 0.01, %v1016_v25  ;;  %v1141_v33 = vmax.f32 %v1013_v21, %v1109_v56 }
 0x2a0   : > { %v1108_v32 = vmul.f32 0.01, %v1008_v29  ;;  %v1139_v35 = vmax.f32 %v1005_v23, %v1107_v28 }
 0x2a1   : > { %v1142_v34 = vmax.f32 %v1016_v25, %v1110_v30 }
 0x2a2   : > { %v1140_v36 = vmax.f32 %v1008_v29, %v1108_v32 }
 0x2a3   : > { %v1168_v62 = vpack.c.bf16 %v1142_v34, %v1141_v33 }
 0x2a4   : > { %v1167_v38 = vpack.c.bf16 %v1140_v36, %v1139_v35 }
 0x2a6   : > { %3352 = vmatprep.mubr.bf16.mxu1 %v1167_v38 }
 0x2a7   : > { %3353 = vmatmul.mubr.bf16.gmra.mrb[72].mxu1 %v1168_v62 }
 0x2aa   : > { %v3310_v39 = vpop.f32.mrb[44].mxu1 }
 0x2ab   : > { %v1029_v37 = vadd.f32 %v3310_v39, %v4304_v41  ;;  %v1020_v4 = vpop.f32.mrb[45].mxu1 }
 0x2ac   : > { %v1021_v31 = vadd.f32 %v1020_v4, %v4304_v41  ;;  %v3311_v0 = vpop.f32.mrb[46].mxu1 }
 0x2ad   : > { %v1113_v27 = vmul.f32 0.01, %v1029_v37  ;;  %v1032_v40 = vadd.f32 %v3311_v0, %v4304_v41  ;;  %v1023_v42 = vpop.f32.mrb[47].mxu1 }
 0x2ae   : > { %v1111_v43 = vmul.f32 0.01, %v1021_v31  ;;  %v1024_v44 = vadd.f32 %v1023_v42, %v4304_v41 }
 0x2af   : > { %v1114_v45 = vmul.f32 0.01, %v1032_v40  ;;  %v1145_v47 = vmax.f32 %v1029_v37, %v1113_v27 }
 0x2b0   : > { %v1112_v46 = vmul.f32 0.01, %v1024_v44  ;;  %v1143_v49 = vmax.f32 %v1021_v31, %v1111_v43 }
 0x2b1   : > { %v1146_v48 = vmax.f32 %v1032_v40, %v1114_v45 }
 0x2b2   : > { %v1144_v50 = vmax.f32 %v1024_v44, %v1112_v46  ;;  %v3314_v51 = vpop.f32.mrb[48].mxu1 }
 0x2b3   : > { %v1045_v52 = vadd.f32 %v3314_v51, %v4304_v41  ;;  %v1036_v53 = vpop.f32.mrb[49].mxu1  ;;  %v1170_v54 = vpack.c.bf16 %v1146_v48, %v1145_v47 }
 0x2b4   : > { %v1037_v55 = vadd.f32 %v1036_v53, %v4304_v41  ;;  %v3315_v57 = vpop.f32.mrb[50].mxu1  ;;  %v1169_v59 = vpack.c.bf16 %v1144_v50, %v1143_v49 }
 0x2b5   : > { %v1117_v61 = vmul.f32 0.01, %v1045_v52  ;;  %v1048_v63 = vadd.f32 %v3315_v57, %v4304_v41  ;;  %v1039_v1 = vpop.f32.mrb[51].mxu1 }
 0x2b6   : > { %v1115_v2 = vmul.f32 0.01, %v1037_v55  ;;  %v1040_v3 = vadd.f32 %v1039_v1, %v4304_v41  ;;  %3356 = vmatprep.mubr.bf16.mxu1 %v1169_v59 }
 0x2b7   : > { %v1149_v5 = vmax.f32 %v1045_v52, %v1117_v61  ;;  %v1118_v6 = vmul.f32 0.01, %v1048_v63  ;;  %3357 = vmatmul.mubr.bf16.gmra.mrb[76].mxu1 %v1170_v54 }
 0x2b8   : > { %v1116_v7 = vmul.f32 0.01, %v1040_v3  ;;  %v1147_v9 = vmax.f32 %v1037_v55, %v1115_v2 }
 0x2b9   : > { %v1150_v8 = vmax.f32 %v1048_v63, %v1118_v6  ;;  %v3669_v6 = vld [vmem:[#allocation7 + $0xb8] sm:$0xff]  }
 0x2ba   : > { %v1148_v10 = vmax.f32 %v1040_v3, %v1116_v7  ;;  %v3318_v11 = vpop.f32.mrb[52].mxu1  ;;  %3390 = vmatprep.subr.bf16.mxu0 %v3669_v6  ;;  %v3670_v7 = vld [vmem:[#allocation7 + $0xc0] sm:$0xff]  }
 0x2bb   : > { %v1061_v12 = vadd.f32 %v3318_v11, %v4304_v41  ;;  %v1052_v13 = vpop.f32.mrb[53].mxu1  ;;  %v1172_v14 = vpack.c.bf16 %v1150_v8, %v1149_v5  ;;  %3391 = vmatpush3.bf16.msra.mxu0 %v3669_v6  ;;  %v3671_v8 = vld [vmem:[#allocation7 + $0xc8] sm:$0xff]   ;;  %3424 = vmatprep.subr.bf16.mxu1 %v3670_v7 }
 0x2bc   : > { %v1053_v15 = vadd.f32 %v1052_v13, %v4304_v41  ;;  %v3319_v16 = vpop.f32.mrb[54].mxu1  ;;  %v1171_v17 = vpack.c.bf16 %v1148_v10, %v1147_v9  ;;  %3425 = vmatpush3.bf16.msra.mxu1 %v3670_v7  ;;  %v3673_v9 = vld [vmem:[#allocation7 + $0xd8] sm:$0xff]   ;;  %v3674_v10 = vld [vmem:[#allocation7 + $0xe0] sm:$0xff]   ;;  %v3675_v11 = vld [vmem:[#allocation7 + $0xe8] sm:$0xff]   ;;  %v1198_v13 = vsub.s32 2, %v4246_v58 }
 0x2bd   : > { %v1121_v18 = vmul.f32 0.01, %v1061_v12  ;;  %v1064_v19 = vadd.f32 %v3319_v16, %v4304_v41  ;;  %v1055_v20 = vpop.f32.mrb[55].mxu1  ;;  %3426 = vmatprep.subr.bf16.mxu1 %v3671_v8 }
 0x2be   : > { %v1119_v21 = vmul.f32 0.01, %v1053_v15  ;;  %v1056_v22 = vadd.f32 %v1055_v20, %v4304_v41  ;;  %3360 = vmatprep.mubr.bf16.mxu1 %v1171_v17 }
 0x2bf   : > { %v1153_v23 = vmax.f32 %v1061_v12, %v1121_v18  ;;  %v1122_v24 = vmul.f32 0.01, %v1064_v19  ;;  %3361 = vmatmul.mubr.bf16.gmra.mrb[80].mxu1 %v1172_v14  ;;  %v3676_v12 = vld [vmem:[#allocation7 + $0xf0] sm:$0xff]   ;;  %v4340_v14 = vrot.slane %v4249_v60, %v1198_v13 }
 0x2c0   : > { %v1151_v56 = vmax.f32 %v1053_v15, %v1119_v21  ;;  %v1120_v25 = vmul.f32 0.01, %v1056_v22  ;;  %3427 = vmatpush3.bf16.msra.mxu1 %v3671_v8 }
 0x2c1   : > { %v1154_v26 = vmax.f32 %v1064_v19, %v1122_v24 }
 0x2c2   : > { %v1152_v28 = vmax.f32 %v1056_v22, %v1120_v25  ;;  %v3322_v29 = vpop.f32.mrb[56].mxu1 }
 0x2c3   : > { %v1077_v30 = vadd.f32 %v3322_v29, %v4304_v41  ;;  %v1068_v32 = vpop.f32.mrb[57].mxu1  ;;  %v1174_v33 = vpack.c.bf16 %v1154_v26, %v1153_v23 }
 0x2c4   : > { %v1069_v34 = vadd.f32 %v1068_v32, %v4304_v41  ;;  %v3323_v35 = vpop.f32.mrb[58].mxu1  ;;  %v1173_v36 = vpack.c.bf16 %v1152_v28, %v1151_v56 }
 0x2c5   : > { %v1125_v62 = vmul.f32 0.01, %v1077_v30  ;;  %v1080_v38 = vadd.f32 %v3323_v35, %v4304_v41  ;;  %v1071_v39 = vpop.f32.mrb[59].mxu1 }
 0x2c6   : > { %v1123_v37 = vmul.f32 0.01, %v1069_v34  ;;  %v1072_v4 = vadd.f32 %v1071_v39, %v4304_v41  ;;  %3364 = vmatprep.mubr.bf16.mxu1 %v1173_v36 }
 0x2c7   : > { %v1157_v31 = vmax.f32 %v1077_v30, %v1125_v62  ;;  %v1126_v0 = vmul.f32 0.01, %v1080_v38  ;;  %3365 = vmatmul.mubr.bf16.gmra.mrb[84].mxu1 %v1174_v33 }
 0x2c8   : > { %v1155_v27 = vmax.f32 %v1069_v34, %v1123_v37  ;;  %v1124_v40 = vmul.f32 0.01, %v1072_v4 }
 0x2c9   : > { %v1158_v42 = vmax.f32 %v1080_v38, %v1126_v0 }
 0x2ca   : > { %v1156_v43 = vmax.f32 %v1072_v4, %v1124_v40  ;;  %v3326_v44 = vpop.f32.mrb[60].mxu1 }
 0x2cb   : > { %v1093_v45 = vadd.f32 %v3326_v44, %v4304_v41  ;;  %v1084_v46 = vpop.f32.mrb[61].mxu1  ;;  %v1176_v47 = vpack.c.bf16 %v1158_v42, %v1157_v31 }
 0x2cc   : > { %v1175_v48 = vpack.c.bf16 %v1156_v43, %v1155_v27  ;;  %v1085_v49 = vadd.f32 %v1084_v46, %v4304_v41  ;;  %v3327_v50 = vpop.f32.mrb[62].mxu1 }
 0x2cd   : > { %v1129_v51 = vmul.f32 0.01, %v1093_v45  ;;  %v1096_v52 = vadd.f32 %v3327_v50, %v4304_v41  ;;  %v1087_v53 = vpop.f32.mrb[63].mxu1 }
 0x2ce   : > { %3368 = vmatprep.mubr.bf16.mxu1 %v1175_v48  ;;  %v1127_v54 = vmul.f32 0.01, %v1085_v49  ;;  %v1088_v55 = vadd.f32 %v1087_v53, %v4304_v41  ;;  %v3672_v41 = vld [vmem:[#allocation7 + $0xd0] sm:$0xff]  }
 0x2cf   : > { %v1161_v57 = vmax.f32 %v1093_v45, %v1129_v51  ;;  %3369 = vmatmul.mubr.bf16.gmra.mrb[88].mxu1 %v1176_v47  ;;  %v1130_v59 = vmul.f32 0.01, %v1096_v52  ;;  %3428 = vmatprep.subr.bf16.mxu1 %v3672_v41 }
 0x2d0   : > { %v1159_v61 = vmax.f32 %v1085_v49, %v1127_v54  ;;  %v1128_v63 = vmul.f32 0.01, %v1088_v55  ;;  %3429 = vmatpush3.bf16.msra.mxu1 %v3672_v41 }
 0x2d1   : > { %v1162_v1 = vmax.f32 %v1096_v52, %v1130_v59  ;;  %3430 = vmatprep.subr.bf16.mxu1 %v3673_v9 }
 0x2d2   : > { %v1160_v2 = vmax.f32 %v1088_v55, %v1128_v63 }
 0x2d3   : > { %v1178_v3 = vpack.c.bf16 %v1162_v1, %v1161_v57 }
 0x2d4   : > { %v1177_v5 = vpack.c.bf16 %v1160_v2, %v1159_v61  ;;  %3431 = vmatpush3.bf16.msra.mxu1 %v3673_v9 }
 0x2d5   : > { %3432 = vmatprep.subr.bf16.mxu1 %v3674_v10 }
 0x2d6   : > { %3372 = vmatprep.mubr.bf16.mxu1 %v1177_v5 }
 0x2d7   : > { %3373 = vmatmul.mubr.bf16.gmra.mrb[92].mxu1 %v1178_v3 }
 0x2d8   : > { %3433 = vmatpush3.bf16.msra.mxu1 %v3674_v10 }
 0x2d9   : > { %3434 = vmatprep.subr.bf16.mxu1 %v3675_v11 }
 0x2dc   : > { %3435 = vmatpush3.bf16.msra.mxu1 %v3675_v11 }
 0x2dd   : > { %3436 = vmatprep.subr.bf16.mxu1 %v3676_v12 }
 0x2e0   : > { %3437 = vmatpush3.bf16.msra.mxu1 %v3676_v12 }
 0x35a   : > { %v3346_v15 = vpop.f32.mrb[64].mxu1 }
 0x35b   : > { %v1291_v16 = vadd.f32 %v3346_v15, %v4340_v14  ;;  %v1282_v17 = vpop.f32.mrb[65].mxu1 }
 0x35c   : > { %v1283_v18 = vadd.f32 %v1282_v17, %v4340_v14  ;;  %v3347_v19 = vpop.f32.mrb[66].mxu1 }
 0x35d   : > { %v1411_v20 = vmul.f32 0.01, %v1291_v16  ;;  %v1294_v21 = vadd.f32 %v3347_v19, %v4340_v14  ;;  %v1285_v22 = vpop.f32.mrb[67].mxu1 }
 0x35e   : > { %v1409_v23 = vmul.f32 0.01, %v1283_v18  ;;  %v1286_v24 = vadd.f32 %v1285_v22, %v4340_v14 }
 0x35f   : > { %v1412_v56 = vmul.f32 0.01, %v1294_v21  ;;  %v1443_v26 = vmax.f32 %v1291_v16, %v1411_v20 }
 0x360   : > { %v1410_v25 = vmul.f32 0.01, %v1286_v24  ;;  %v1441_v60 = vmax.f32 %v1283_v18, %v1409_v23 }
 0x361   : > { %v1444_v28 = vmax.f32 %v1294_v21, %v1412_v56 }
 0x362   : > { %v1442_v29 = vmax.f32 %v1286_v24, %v1410_v25 }
 0x363   : > { %v1474_v30 = vpack.c.bf16 %v1444_v28, %v1443_v26 }
 0x364   : > { %v1473_v32 = vpack.c.bf16 %v1442_v29, %v1441_v60 }
 0x366   : > { %3392 = vmatprep.mubr.bf16.mxu0 %v1473_v32 }
 0x367   : > { %3393 = vmatmul.mubr.bf16.vlgmr.msra.gmra.mrb[32].mxu0 %v1474_v30 }
 0x36a   : > { %v3350_v33 = vpop.f32.mrb[68].mxu1 }
 0x36b   : > { %v1307_v34 = vadd.f32 %v3350_v33, %v4340_v14  ;;  %v1298_v35 = vpop.f32.mrb[69].mxu1 }
 0x36c   : > { %v1299_v36 = vadd.f32 %v1298_v35, %v4340_v14  ;;  %v3351_v62 = vpop.f32.mrb[70].mxu1 }
 0x36d   : > { %v1415_v38 = vmul.f32 0.01, %v1307_v34  ;;  %v1310_v39 = vadd.f32 %v3351_v62, %v4340_v14  ;;  %v1301_v37 = vpop.f32.mrb[71].mxu1 }
 0x36e   : > { %v1413_v4 = vmul.f32 0.01, %v1299_v36  ;;  %v1302_v31 = vadd.f32 %v1301_v37, %v4340_v14 }
 0x36f   : > { %v1416_v0 = vmul.f32 0.01, %v1310_v39  ;;  %v1447_v40 = vmax.f32 %v1307_v34, %v1415_v38 }
 0x370   : > { %v1414_v27 = vmul.f32 0.01, %v1302_v31  ;;  %v1445_v43 = vmax.f32 %v1299_v36, %v1413_v4 }
 0x371   : > { %v1448_v42 = vmax.f32 %v1310_v39, %v1416_v0 }
 0x372   : > { %v1446_v44 = vmax.f32 %v1302_v31, %v1414_v27 }
 0x373   : > { %v1476_v45 = vpack.c.bf16 %v1448_v42, %v1447_v40 }
 0x374   : > { %v1475_v46 = vpack.c.bf16 %v1446_v44, %v1445_v43 }
 0x376   : > { %3396 = vmatprep.mubr.bf16.mxu0 %v1475_v46 }
 0x377   : > { %3397 = vmatmul.mubr.bf16.gmra.mrb[36].mxu0 %v1476_v45 }
 0x37a   : > { %v3354_v47 = vpop.f32.mrb[72].mxu1 }
 0x37b   : > { %v1323_v48 = vadd.f32 %v3354_v47, %v4340_v14  ;;  %v1314_v49 = vpop.f32.mrb[73].mxu1 }
 0x37c   : > { %v1315_v50 = vadd.f32 %v1314_v49, %v4340_v14  ;;  %v3355_v51 = vpop.f32.mrb[74].mxu1 }
 0x37d   : > { %v1419_v52 = vmul.f32 0.01, %v1323_v48  ;;  %v1326_v53 = vadd.f32 %v3355_v51, %v4340_v14  ;;  %v1317_v54 = vpop.f32.mrb[75].mxu1 }
 0x37e   : > { %v1417_v55 = vmul.f32 0.01, %v1315_v50  ;;  %v1318_v57 = vadd.f32 %v1317_v54, %v4340_v14 }
 0x37f   : > { %v1420_v59 = vmul.f32 0.01, %v1326_v53  ;;  %v1451_v63 = vmax.f32 %v1323_v48, %v1419_v52 }
 0x380   : > { %v1418_v61 = vmul.f32 0.01, %v1318_v57  ;;  %v1449_v2 = vmax.f32 %v1315_v50, %v1417_v55 }
 0x381   : > { %v1452_v1 = vmax.f32 %v1326_v53, %v1420_v59 }
 0x382   : > { %v1450_v3 = vmax.f32 %v1318_v57, %v1418_v61 }
 0x383   : > { %v1478_v5 = vpack.c.bf16 %v1452_v1, %v1451_v63 }
 0x384   : > { %v1477_v6 = vpack.c.bf16 %v1450_v3, %v1449_v2 }
 0x386   : > { %3400 = vmatprep.mubr.bf16.mxu0 %v1477_v6 }
 0x387   : > { %3401 = vmatmul.mubr.bf16.gmra.mrb[40].mxu0 %v1478_v5 }
 0x38a   : > { %v3358_v7 = vpop.f32.mrb[76].mxu1 }
 0x38b   : > { %v1339_v8 = vadd.f32 %v3358_v7, %v4340_v14  ;;  %v1330_v41 = vpop.f32.mrb[77].mxu1 }
 0x38c   : > { %v1331_v9 = vadd.f32 %v1330_v41, %v4340_v14  ;;  %v3359_v10 = vpop.f32.mrb[78].mxu1 }
 0x38d   : > { %v1423_v11 = vmul.f32 0.01, %v1339_v8  ;;  %v1342_v12 = vadd.f32 %v3359_v10, %v4340_v14  ;;  %v1333_v13 = vpop.f32.mrb[79].mxu1 }
 0x38e   : > { %v1421_v15 = vmul.f32 0.01, %v1331_v9  ;;  %v1334_v16 = vadd.f32 %v1333_v13, %v4340_v14 }
 0x38f   : > { %v1424_v17 = vmul.f32 0.01, %v1342_v12  ;;  %v1455_v19 = vmax.f32 %v1339_v8, %v1423_v11 }
 0x390   : > { %v1422_v18 = vmul.f32 0.01, %v1334_v16  ;;  %v1453_v21 = vmax.f32 %v1331_v9, %v1421_v15 }
 0x391   : > { %v1456_v20 = vmax.f32 %v1342_v12, %v1424_v17 }
 0x392   : > { %v1454_v22 = vmax.f32 %v1334_v16, %v1422_v18  ;;  %v3362_v23 = vpop.f32.mrb[80].mxu1 }
 0x393   : > { %v1355_v24 = vadd.f32 %v3362_v23, %v4340_v14  ;;  %v1346_v56 = vpop.f32.mrb[81].mxu1  ;;  %v1480_v25 = vpack.c.bf16 %v1456_v20, %v1455_v19 }
 0x394   : > { %v1347_v26 = vadd.f32 %v1346_v56, %v4340_v14  ;;  %v3363_v28 = vpop.f32.mrb[82].mxu1  ;;  %v1479_v60 = vpack.c.bf16 %v1454_v22, %v1453_v21 }
 0x395   : > { %v1427_v29 = vmul.f32 0.01, %v1355_v24  ;;  %v1358_v30 = vadd.f32 %v3363_v28, %v4340_v14  ;;  %v1349_v32 = vpop.f32.mrb[83].mxu1 }
 0x396   : > { %v1425_v33 = vmul.f32 0.01, %v1347_v26  ;;  %v1350_v34 = vadd.f32 %v1349_v32, %v4340_v14  ;;  %3404 = vmatprep.mubr.bf16.mxu0 %v1479_v60 }
 0x397   : > { %v1428_v35 = vmul.f32 0.01, %v1358_v30  ;;  %3405 = vmatmul.mubr.bf16.gmra.mrb[44].mxu0 %v1480_v25  ;;  %v1459_v62 = vmax.f32 %v1355_v24, %v1427_v29 }
 0x398   : > { %v1426_v36 = vmul.f32 0.01, %v1350_v34  ;;  %v1457_v39 = vmax.f32 %v1347_v26, %v1425_v33 }
 0x399   : > { %v1460_v38 = vmax.f32 %v1358_v30, %v1428_v35  ;;  %v3677_v35 = vld [vmem:[#allocation7 + $0xf8] sm:$0xff]  }
 0x39a   : > { %v1458_v37 = vmax.f32 %v1350_v34, %v1426_v36  ;;  %v3366_v4 = vpop.f32.mrb[84].mxu1  ;;  %3438 = vmatprep.subr.bf16.mxu1 %v3677_v35  ;;  %v3678_v36 = vld [vmem:[#allocation8] ss:$8 sps:$4 sm:$0xff]  }
 0x39b   : > { %v1371_v31 = vadd.f32 %v3366_v4, %v4340_v14  ;;  %v1362_v0 = vpop.f32.mrb[85].mxu1  ;;  %v1482_v27 = vpack.c.bf16 %v1460_v38, %v1459_v62  ;;  %3439 = vmatpush3.bf16.msra.mxu1 %v3677_v35  ;;  %v3680_v62 = vld [vmem:[#allocation8 + $0x4] ss:$8 sps:$4 sm:$0xff]   ;;  %v3683_v38 = vld [vmem:[#allocation8 + $0x14] ss:$8 sps:$4 sm:$0xff]  }
 0x39c   : > { %v1363_v40 = vadd.f32 %v1362_v0, %v4340_v14  ;;  %v3367_v42 = vpop.f32.mrb[86].mxu1  ;;  %v1481_v43 = vpack.c.bf16 %v1458_v37, %v1457_v39  ;;  %2213 = vmatprep.subr.bf16.mxu0 %v3680_v62  ;;  %v3686_v39 = vld [vmem:[#allocation8 + $0x24] ss:$8 sps:$4 sm:$0xff]   ;;  %v3684_v37 = vld [vmem:[#allocation8 + $0x20] ss:$8 sps:$4 sm:$0xff]  }
 0x39d   : > { %v1431_v44 = vmul.f32 0.01, %v1371_v31  ;;  %v1374_v45 = vadd.f32 %v3367_v42, %v4340_v14  ;;  %v1365_v46 = vpop.f32.mrb[87].mxu1  ;;  %2214 = vmatpush1.bf16.msra.mxu0 %v3678_v36  ;;  %v3689_v4 = vld [vmem:[#allocation8 + $0x34] ss:$8 sps:$4 sm:$0xff]  }
 0x39e   : > { %v1429_v47 = vmul.f32 0.01, %v1363_v40  ;;  %v1366_v48 = vadd.f32 %v1365_v46, %v4340_v14  ;;  %3408 = vmatprep.mubr.bf16.mxu0 %v1481_v43  ;;  %2215 = vmatprep.subr.bf16.mxu0 %v3683_v38  ;;  %v3692_v0 = vld [vmem:[#allocation8 + $0x44] ss:$8 sps:$4 sm:$0xff]   ;;  %v3693_v42 = vld [vmem:[#allocation8 + $0x50] ss:$8 sps:$4 sm:$0xff]  }
 0x39f   : > { %v1463_v49 = vmax.f32 %v1371_v31, %v1431_v44  ;;  %v1432_v50 = vmul.f32 0.01, %v1374_v45  ;;  %3409 = vmatmul.mubr.bf16.gmra.mrb[48].mxu0 %v1482_v27  ;;  %v3687_v31 = vld [vmem:[#allocation8 + $0x30] ss:$8 sps:$4 sm:$0xff]   ;;  %v3690_v27 = vld [vmem:[#allocation8 + $0x40] ss:$8 sps:$4 sm:$0xff]  }
 0x3a0   : > { %v1461_v51 = vmax.f32 %v1363_v40, %v1429_v47  ;;  %v1430_v52 = vmul.f32 0.01, %v1366_v48  ;;  %v3695_v40 = vld [vmem:[#allocation8 + $0x54] ss:$8 sps:$4 sm:$0xff]   ;;  %v3698_v43 = vld [vmem:[#allocation8 + $0x64] ss:$8 sps:$4 sm:$0xff]  }
 0x3a1   : > { %v1464_v53 = vmax.f32 %v1374_v45, %v1432_v50  ;;  %v3696_v44 = vld [vmem:[#allocation8 + $0x60] ss:$8 sps:$4 sm:$0xff]   ;;  %v1508_v45 = vsub.s32 3, %v4246_v58 }
 0x3a2   : > { %v1462_v54 = vmax.f32 %v1366_v48, %v1430_v52  ;;  %v3370_v55 = vpop.f32.mrb[88].mxu1  ;;  %v4375_v46 = vld [vmem:[#allocation10] sm:$0xff] }
 0x3a3   : > { %v1387_v57 = vadd.f32 %v3370_v55, %v4340_v14  ;;  %v1378_v59 = vpop.f32.mrb[89].mxu1  ;;  %v1484_v61 = vpack.c.bf16 %v1464_v53, %v1463_v49  ;;  %v4378_v47 = vrot.slane %v4375_v46, %v1508_v45 }
 0x3a4   : > { %v1379_v63 = vadd.f32 %v1378_v59, %v4340_v14  ;;  %v3371_v1 = vpop.f32.mrb[90].mxu1  ;;  %v1483_v2 = vpack.c.bf16 %v1462_v54, %v1461_v51 }
 0x3a5   : > { %v1435_v3 = vmul.f32 0.01, %v1387_v57  ;;  %v1390_v5 = vadd.f32 %v3371_v1, %v4340_v14  ;;  %v1381_v6 = vpop.f32.mrb[91].mxu1 }
 0x3a6   : > { %v1433_v7 = vmul.f32 0.01, %v1379_v63  ;;  %v1382_v8 = vadd.f32 %v1381_v6, %v4340_v14  ;;  %3412 = vmatprep.mubr.bf16.mxu0 %v1483_v2 }
 0x3a7   : > { %v1467_v41 = vmax.f32 %v1387_v57, %v1435_v3  ;;  %v1436_v9 = vmul.f32 0.01, %v1390_v5  ;;  %3413 = vmatmul.mubr.bf16.gmra.mrb[52].mxu0 %v1484_v61 }
 0x3a8   : > { %v1465_v10 = vmax.f32 %v1379_v63, %v1433_v7  ;;  %v1434_v11 = vmul.f32 0.01, %v1382_v8 }
 0x3a9   : > { %v1468_v12 = vmax.f32 %v1390_v5, %v1436_v9 }
 0x3aa   : > { %v1466_v13 = vmax.f32 %v1382_v8, %v1434_v11  ;;  %v3374_v15 = vpop.f32.mrb[92].mxu1 }
 0x3ab   : > { %v1403_v16 = vadd.f32 %v3374_v15, %v4340_v14  ;;  %v1394_v17 = vpop.f32.mrb[93].mxu1  ;;  %v1486_v18 = vpack.c.bf16 %v1468_v12, %v1467_v41 }
 0x3ac   : > { %v1485_v19 = vpack.c.bf16 %v1466_v13, %v1465_v10  ;;  %v1395_v20 = vadd.f32 %v1394_v17, %v4340_v14  ;;  %v3375_v21 = vpop.f32.mrb[94].mxu1 }
 0x3ad   : > { %v1439_v22 = vmul.f32 0.01, %v1403_v16  ;;  %v1406_v23 = vadd.f32 %v3375_v21, %v4340_v14  ;;  %v1397_v24 = vpop.f32.mrb[95].mxu1 }
 0x3ae   : > { %3416 = vmatprep.mubr.bf16.mxu0 %v1485_v19  ;;  %v1437_v56 = vmul.f32 0.01, %v1395_v20  ;;  %v1398_v25 = vadd.f32 %v1397_v24, %v4340_v14  ;;  %v3681_v14 = vld [vmem:[#allocation8 + $0x10] ss:$8 sps:$4 sm:$0xff]  }
 0x3af   : > { %v1471_v26 = vmax.f32 %v1403_v16, %v1439_v22  ;;  %3417 = vmatmul.mubr.bf16.gmra.mrb[56].mxu0 %v1486_v18  ;;  %v1440_v28 = vmul.f32 0.01, %v1406_v23 }
 0x3b0   : > { %v1469_v60 = vmax.f32 %v1395_v20, %v1437_v56  ;;  %v1438_v29 = vmul.f32 0.01, %v1398_v25  ;;  %2216 = vmatpush1.bf16.msra.mxu0 %v3681_v14 }
 0x3b1   : > { %v1472_v30 = vmax.f32 %v1406_v23, %v1440_v28  ;;  %2217 = vmatprep.subr.bf16.mxu0 %v3686_v39 }
 0x3b2   : > { %v1470_v32 = vmax.f32 %v1398_v25, %v1438_v29 }
 0x3b3   : > { %v1488_v33 = vpack.c.bf16 %v1472_v30, %v1471_v26 }
 0x3b4   : > { %v1487_v34 = vpack.c.bf16 %v1470_v32, %v1469_v60  ;;  %2218 = vmatpush1.bf16.msra.mxu0 %v3684_v37 }
 0x3b5   : > { %2219 = vmatprep.subr.bf16.mxu0 %v3689_v4 }
 0x3b6   : > { %3420 = vmatprep.mubr.bf16.mxu0 %v1487_v34 }
 0x3b7   : > { %3421 = vmatmul.mubr.bf16.gmra.mrb[60].mxu0 %v1488_v33 }
 0x3b8   : > { %2220 = vmatpush1.bf16.msra.mxu0 %v3687_v31 }
 0x3b9   : > { %2221 = vmatprep.subr.bf16.mxu0 %v3692_v0 }
 0x3bc   : > { %2222 = vmatpush1.bf16.msra.mxu0 %v3690_v27 }
 0x3bd   : > { %2223 = vmatprep.subr.bf16.mxu0 %v3695_v40 }
 0x3c0   : > { %2224 = vmatpush1.bf16.msra.mxu0 %v3693_v42 }
 0x3c1   : > { %2225 = vmatprep.subr.bf16.mxu0 %v3698_v43 }
 0x3c4   : > { %2226 = vmatpush1.bf16.msra.mxu0 %v3696_v44 }
 0x43a   : > { %v3394_v48 = vpop.f32.mrb[32].mxu0 }
 0x43b   : > { %v1601_v49 = vadd.f32 %v3394_v48, %v4378_v47  ;;  %v1592_v50 = vpop.f32.mrb[33].mxu0 }
 0x43c   : > { %v1593_v51 = vadd.f32 %v1592_v50, %v4378_v47  ;;  %v3395_v52 = vpop.f32.mrb[34].mxu0 }
 0x43d   : > { %v1721_v53 = vmul.f32 0.01, %v1601_v49  ;;  %v1604_v54 = vadd.f32 %v3395_v52, %v4378_v47  ;;  %v1595_v55 = vpop.f32.mrb[35].mxu0 }
 0x43e   : > { %v1719_v57 = vmul.f32 0.01, %v1593_v51  ;;  %v1596_v59 = vadd.f32 %v1595_v55, %v4378_v47 }
 0x43f   : > { %v1722_v61 = vmul.f32 0.01, %v1604_v54  ;;  %v1753_v1 = vmax.f32 %v1601_v49, %v1721_v53 }
 0x440   : > { %v1720_v63 = vmul.f32 0.01, %v1596_v59  ;;  %v1751_v3 = vmax.f32 %v1593_v51, %v1719_v57 }
 0x441   : > { %v1754_v2 = vmax.f32 %v1604_v54, %v1722_v61 }
 0x442   : > { %v1752_v5 = vmax.f32 %v1596_v59, %v1720_v63 }
 0x443   : > { %v1784_v6 = vpack.c.bf16 %v1754_v2, %v1753_v1 }
 0x444   : > { %v1783_v7 = vpack.c.bf16 %v1752_v5, %v1751_v3 }
 0x446   : > { %3440 = vmatprep.mubr.bf16.mxu1 %v1783_v7 }
 0x447   : > { %3441 = vmatmul.mubr.bf16.vlgmr.msra.gmra.mrb[96].mxu1 %v1784_v6 }
 0x44a   : > { %v3398_v8 = vpop.f32.mrb[36].mxu0 }
 0x44b   : > { %v1617_v41 = vadd.f32 %v3398_v8, %v4378_v47  ;;  %v1608_v9 = vpop.f32.mrb[37].mxu0 }
 0x44c   : > { %v1609_v10 = vadd.f32 %v1608_v9, %v4378_v47  ;;  %v3399_v11 = vpop.f32.mrb[38].mxu0 }
 0x44d   : > { %v1725_v12 = vmul.f32 0.01, %v1617_v41  ;;  %v1620_v13 = vadd.f32 %v3399_v11, %v4378_v47  ;;  %v1611_v15 = vpop.f32.mrb[39].mxu0 }
 0x44e   : > { %v1723_v16 = vmul.f32 0.01, %v1609_v10  ;;  %v1612_v17 = vadd.f32 %v1611_v15, %v4378_v47 }
 0x44f   : > { %v1726_v18 = vmul.f32 0.01, %v1620_v13  ;;  %v1757_v20 = vmax.f32 %v1617_v41, %v1725_v12 }
 0x450   : > { %v1724_v19 = vmul.f32 0.01, %v1612_v17  ;;  %v1755_v22 = vmax.f32 %v1609_v10, %v1723_v16 }
 0x451   : > { %v1758_v21 = vmax.f32 %v1620_v13, %v1726_v18 }
 0x452   : > { %v1756_v23 = vmax.f32 %v1612_v17, %v1724_v19 }
 0x453   : > { %v1786_v24 = vpack.c.bf16 %v1758_v21, %v1757_v20 }
 0x454   : > { %v1785_v56 = vpack.c.bf16 %v1756_v23, %v1755_v22 }
 0x456   : > { %3444 = vmatprep.mubr.bf16.mxu1 %v1785_v56 }
 0x457   : > { %3445 = vmatmul.mubr.bf16.gmra.mrb[100].mxu1 %v1786_v24 }
 0x45a   : > { %v3402_v25 = vpop.f32.mrb[40].mxu0 }
 0x45b   : > { %v1633_v26 = vadd.f32 %v3402_v25, %v4378_v47  ;;  %v1624_v28 = vpop.f32.mrb[41].mxu0 }
 0x45c   : > { %v1625_v60 = vadd.f32 %v1624_v28, %v4378_v47  ;;  %v3403_v29 = vpop.f32.mrb[42].mxu0 }
 0x45d   : > { %v1729_v30 = vmul.f32 0.01, %v1633_v26  ;;  %v1636_v32 = vadd.f32 %v3403_v29, %v4378_v47  ;;  %v1627_v33 = vpop.f32.mrb[43].mxu0 }
 0x45e   : > { %v1727_v34 = vmul.f32 0.01, %v1625_v60  ;;  %v1628_v35 = vadd.f32 %v1627_v33, %v4378_v47 }
 0x45f   : > { %v1730_v36 = vmul.f32 0.01, %v1636_v32  ;;  %v1761_v38 = vmax.f32 %v1633_v26, %v1729_v30 }
 0x460   : > { %v1728_v62 = vmul.f32 0.01, %v1628_v35  ;;  %v1759_v39 = vmax.f32 %v1625_v60, %v1727_v34 }
 0x461   : > { %v1762_v14 = vmax.f32 %v1636_v32, %v1730_v36 }
 0x462   : > { %v1760_v37 = vmax.f32 %v1628_v35, %v1728_v62 }
 0x463   : > { %v1788_v4 = vpack.c.bf16 %v1762_v14, %v1761_v38 }
 0x464   : > { %v1787_v31 = vpack.c.bf16 %v1760_v37, %v1759_v39 }
 0x466   : > { %3448 = vmatprep.mubr.bf16.mxu1 %v1787_v31 }
 0x467   : > { %3449 = vmatmul.mubr.bf16.gmra.mrb[104].mxu1 %v1788_v4 }
 0x46a   : > { %v3406_v0 = vpop.f32.mrb[44].mxu0 }
 0x46b   : > { %v1649_v27 = vadd.f32 %v3406_v0, %v4378_v47  ;;  %v1640_v40 = vpop.f32.mrb[45].mxu0 }
 0x46c   : > { %v1641_v42 = vadd.f32 %v1640_v40, %v4378_v47  ;;  %v3407_v43 = vpop.f32.mrb[46].mxu0 }
 0x46d   : > { %v1733_v44 = vmul.f32 0.01, %v1649_v27  ;;  %v1652_v45 = vadd.f32 %v3407_v43, %v4378_v47  ;;  %v1643_v48 = vpop.f32.mrb[47].mxu0 }
 0x46e   : > { %v1731_v49 = vmul.f32 0.01, %v1641_v42  ;;  %v1644_v50 = vadd.f32 %v1643_v48, %v4378_v47 }
 0x46f   : > { %v1734_v51 = vmul.f32 0.01, %v1652_v45  ;;  %v1765_v53 = vmax.f32 %v1649_v27, %v1733_v44 }
 0x470   : > { %v1732_v52 = vmul.f32 0.01, %v1644_v50  ;;  %v1763_v55 = vmax.f32 %v1641_v42, %v1731_v49 }
 0x471   : > { %v1766_v54 = vmax.f32 %v1652_v45, %v1734_v51 }
 0x472   : > { %v1764_v57 = vmax.f32 %v1644_v50, %v1732_v52  ;;  %v3410_v59 = vpop.f32.mrb[48].mxu0 }
 0x473   : > { %v1665_v61 = vadd.f32 %v3410_v59, %v4378_v47  ;;  %v1656_v63 = vpop.f32.mrb[49].mxu0  ;;  %v1790_v1 = vpack.c.bf16 %v1766_v54, %v1765_v53 }
 0x474   : > { %v1657_v2 = vadd.f32 %v1656_v63, %v4378_v47  ;;  %v3411_v3 = vpop.f32.mrb[50].mxu0  ;;  %v1789_v5 = vpack.c.bf16 %v1764_v57, %v1763_v55 }
 0x475   : > { %v1737_v6 = vmul.f32 0.01, %v1665_v61  ;;  %v1668_v7 = vadd.f32 %v3411_v3, %v4378_v47  ;;  %v1659_v8 = vpop.f32.mrb[51].mxu0 }
 0x476   : > { %v1735_v41 = vmul.f32 0.01, %v1657_v2  ;;  %v1660_v9 = vadd.f32 %v1659_v8, %v4378_v47  ;;  %3452 = vmatprep.mubr.bf16.mxu1 %v1789_v5 }
 0x477   : > { %v1738_v10 = vmul.f32 0.01, %v1668_v7  ;;  %3453 = vmatmul.mubr.bf16.gmra.mrb[108].mxu1 %v1790_v1  ;;  %v1769_v12 = vmax.f32 %v1665_v61, %v1737_v6 }
 0x478   : > { %v1736_v11 = vmul.f32 0.01, %v1660_v9  ;;  %v1767_v15 = vmax.f32 %v1657_v2, %v1735_v41 }
 0x479   : > { %v1770_v13 = vmax.f32 %v1668_v7, %v1738_v10 }
 0x47a   : > { %v1768_v16 = vmax.f32 %v1660_v9, %v1736_v11  ;;  %v3414_v17 = vpop.f32.mrb[52].mxu0  ;;  %v3701_v11 = vld [vmem:[#allocation8 + $0x74] ss:$8 sps:$4 sm:$0xff]  }
 0x47b   : > { %v1681_v18 = vadd.f32 %v3414_v17, %v4378_v47  ;;  %v1672_v19 = vpop.f32.mrb[53].mxu0  ;;  %v1792_v20 = vpack.c.bf16 %v1770_v13, %v1769_v12  ;;  %v3699_v12 = vld [vmem:[#allocation8 + $0x70] ss:$8 sps:$4 sm:$0xff]   ;;  %2227 = vmatprep.subr.bf16.mxu0 %v3701_v11  ;;  %v3930_v13 = vmov 0  }
 0x47c   : > { %v1673_v21 = vadd.f32 %v1672_v19, %v4378_v47  ;;  %v3415_v22 = vpop.f32.mrb[54].mxu0  ;;  %v1791_v23 = vpack.c.bf16 %v1768_v16, %v1767_v15  ;;  %2228 = vmatpush1.bf16.msra.mxu0 %v3699_v12  ;;  %2245 = vmatprep.mubr.bf16.mxu0 %v3930_v13 }
 0x47d   : > { %v1741_v24 = vmul.f32 0.01, %v1681_v18  ;;  %v1684_v56 = vadd.f32 %v3415_v22, %v4378_v47  ;;  %v1675_v25 = vpop.f32.mrb[55].mxu0 }
 0x47e   : > { %v1739_v26 = vmul.f32 0.01, %v1673_v21  ;;  %v1676_v28 = vadd.f32 %v1675_v25, %v4378_v47  ;;  %3456 = vmatprep.mubr.bf16.mxu1 %v1791_v23 }
 0x47f   : > { %v1742_v60 = vmul.f32 0.01, %v1684_v56  ;;  %3457 = vmatmul.mubr.bf16.gmra.mrb[112].mxu1 %v1792_v20  ;;  %v1773_v30 = vmax.f32 %v1681_v18, %v1741_v24 }
 0x480   : > { %v1740_v29 = vmul.f32 0.01, %v1676_v28  ;;  %v1771_v33 = vmax.f32 %v1673_v21, %v1739_v26 }
 0x481   : > { %v1774_v32 = vmax.f32 %v1684_v56, %v1742_v60 }
 0x482   : > { %v1772_v34 = vmax.f32 %v1676_v28, %v1740_v29  ;;  %v3418_v35 = vpop.f32.mrb[56].mxu0 }
 0x483   : > { %v1697_v36 = vadd.f32 %v3418_v35, %v4378_v47  ;;  %v1688_v62 = vpop.f32.mrb[57].mxu0  ;;  %v1794_v38 = vpack.c.bf16 %v1774_v32, %v1773_v30 }
 0x484   : > { %v1689_v14 = vadd.f32 %v1688_v62, %v4378_v47  ;;  %v3419_v39 = vpop.f32.mrb[58].mxu0  ;;  %v1793_v37 = vpack.c.bf16 %v1772_v34, %v1771_v33 }
 0x485   : > { %v1745_v4 = vmul.f32 0.01, %v1697_v36  ;;  %v1700_v31 = vadd.f32 %v3419_v39, %v4378_v47  ;;  %v1691_v0 = vpop.f32.mrb[59].mxu0 }
 0x486   : > { %v1743_v27 = vmul.f32 0.01, %v1689_v14  ;;  %v1692_v40 = vadd.f32 %v1691_v0, %v4378_v47  ;;  %3460 = vmatprep.mubr.bf16.mxu1 %v1793_v37 }
 0x487   : > { %v1777_v42 = vmax.f32 %v1697_v36, %v1745_v4  ;;  %v1746_v43 = vmul.f32 0.01, %v1700_v31  ;;  %3461 = vmatmul.mubr.bf16.gmra.mrb[116].mxu1 %v1794_v38 }
 0x488   : > { %v1775_v44 = vmax.f32 %v1689_v14, %v1743_v27  ;;  %v1744_v45 = vmul.f32 0.01, %v1692_v40 }
 0x489   : > { %v1778_v48 = vmax.f32 %v1700_v31, %v1746_v43 }
 0x48a   : > { %v1776_v49 = vmax.f32 %v1692_v40, %v1744_v45  ;;  %v3422_v50 = vpop.f32.mrb[60].mxu0 }
 0x48b   : > { %v1713_v51 = vadd.f32 %v3422_v50, %v4378_v47  ;;  %v1704_v52 = vpop.f32.mrb[61].mxu0  ;;  %v1796_v53 = vpack.c.bf16 %v1778_v48, %v1777_v42 }
 0x48c   : > { %v1795_v54 = vpack.c.bf16 %v1776_v49, %v1775_v44  ;;  %v1705_v55 = vadd.f32 %v1704_v52, %v4378_v47  ;;  %v3423_v57 = vpop.f32.mrb[62].mxu0 }
 0x48d   : > { %v1749_v59 = vmul.f32 0.01, %v1713_v51  ;;  %v1716_v61 = vadd.f32 %v3423_v57, %v4378_v47  ;;  %v1707_v63 = vpop.f32.mrb[63].mxu0 }
 0x48e   : > { %3464 = vmatprep.mubr.bf16.mxu1 %v1795_v54  ;;  %v1747_v1 = vmul.f32 0.01, %v1705_v55  ;;  %v1708_v2 = vadd.f32 %v1707_v63, %v4378_v47  ;;  %v1818_v47 = vsub.s32 4, %v4246_v58 }
 0x48f   : > { %v1781_v3 = vmax.f32 %v1713_v51, %v1749_v59  ;;  %3465 = vmatmul.mubr.bf16.gmra.mrb[120].mxu1 %v1796_v53  ;;  %v1750_v5 = vmul.f32 0.01, %v1716_v61 }
 0x490   : > { %v1779_v6 = vmax.f32 %v1705_v55, %v1747_v1  ;;  %v1748_v7 = vmul.f32 0.01, %v1708_v2  ;;  %v4415_v15 = vrot.slane %v4375_v46, %v1818_v47 }
 0x491   : > { %v1782_v8 = vmax.f32 %v1716_v61, %v1750_v5 }
 0x492   : > { %v1780_v41 = vmax.f32 %v1708_v2, %v1748_v7 }
 0x493   : > { %v1798_v9 = vpack.c.bf16 %v1782_v8, %v1781_v3 }
 0x494   : > { %v1797_v10 = vpack.c.bf16 %v1780_v41, %v1779_v6 }
 0x496   : > { %3468 = vmatprep.mubr.bf16.mxu1 %v1797_v10 }
 0x497   : > { %3469 = vmatmul.mubr.bf16.gmra.mrb[124].mxu1 %v1798_v9 }
 0x51a   : > { %v3442_v16 = vpop.f32.mrb[96].mxu1 }
 0x51b   : > { %v1911_v17 = vadd.f32 %v3442_v16, %v4415_v15  ;;  %v1902_v18 = vpop.f32.mrb[97].mxu1 }
 0x51c   : > { %v1903_v19 = vadd.f32 %v1902_v18, %v4415_v15  ;;  %v3443_v20 = vpop.f32.mrb[98].mxu1 }
 0x51d   : > { %v2031_v21 = vmul.f32 0.01, %v1911_v17  ;;  %v1914_v22 = vadd.f32 %v3443_v20, %v4415_v15  ;;  %v1905_v23 = vpop.f32.mrb[99].mxu1 }
 0x51e   : > { %v2029_v24 = vmul.f32 0.01, %v1903_v19  ;;  %v1906_v56 = vadd.f32 %v1905_v23, %v4415_v15 }
 0x51f   : > { %v2032_v25 = vmul.f32 0.01, %v1914_v22  ;;  %v2063_v28 = vmax.f32 %v1911_v17, %v2031_v21 }
 0x520   : > { %v2030_v26 = vmul.f32 0.01, %v1906_v56  ;;  %v2061_v29 = vmax.f32 %v1903_v19, %v2029_v24 }
 0x521   : > { %v2064_v60 = vmax.f32 %v1914_v22, %v2032_v25 }
 0x522   : > { %v2062_v30 = vmax.f32 %v1906_v56, %v2030_v26 }
 0x523   : > { %v2094_v32 = vpack.c.bf16 %v2064_v60, %v2063_v28 }
 0x524   : > { %v2093_v33 = vpack.c.bf16 %v2062_v30, %v2061_v29 }
 0x526   : > { %2246 = vmatmul.mubr.bf16.vlgmr.msra.gmra.mrb[64].mxu0 %v2093_v33 }
 0x527   : > { %2255 = vmatprep.mubr.bf16.mxu0 %v3930_v13 }
 0x52a   : > { %v3446_v34 = vpop.f32.mrb[100].mxu1 }
 0x52b   : > { %v1927_v35 = vadd.f32 %v3446_v34, %v4415_v15  ;;  %v1918_v36 = vpop.f32.mrb[101].mxu1 }
 0x52c   : > { %v1919_v62 = vadd.f32 %v1918_v36, %v4415_v15  ;;  %v3447_v38 = vpop.f32.mrb[102].mxu1 }
 0x52d   : > { %v2035_v14 = vmul.f32 0.01, %v1927_v35  ;;  %v1930_v39 = vadd.f32 %v3447_v38, %v4415_v15  ;;  %v1921_v37 = vpop.f32.mrb[103].mxu1 }
 0x52e   : > { %v2033_v4 = vmul.f32 0.01, %v1919_v62  ;;  %v1922_v31 = vadd.f32 %v1921_v37, %v4415_v15  ;;  %2256 = vmatmul.mubr.bf16.gmra.mrb[68].mxu0 %v2094_v32 }
 0x52f   : > { %v2036_v0 = vmul.f32 0.01, %v1930_v39  ;;  %2265 = vmatprep.mubr.bf16.mxu0 %v3930_v13  ;;  %v2067_v40 = vmax.f32 %v1927_v35, %v2035_v14 }
 0x530   : > { %v2034_v27 = vmul.f32 0.01, %v1922_v31  ;;  %v2065_v43 = vmax.f32 %v1919_v62, %v2033_v4 }
 0x531   : > { %v2068_v42 = vmax.f32 %v1930_v39, %v2036_v0 }
 0x532   : > { %v2066_v44 = vmax.f32 %v1922_v31, %v2034_v27 }
 0x533   : > { %v2096_v45 = vpack.c.bf16 %v2068_v42, %v2067_v40 }
 0x534   : > { %v2095_v48 = vpack.c.bf16 %v2066_v44, %v2065_v43 }
 0x536   : > { %2266 = vmatmul.mubr.bf16.gmra.mrb[72].mxu0 %v2095_v48 }
 0x537   : > { %2275 = vmatprep.mubr.bf16.mxu0 %v3930_v13 }
 0x53a   : > { %v3450_v49 = vpop.f32.mrb[104].mxu1 }
 0x53b   : > { %v1943_v50 = vadd.f32 %v3450_v49, %v4415_v15  ;;  %v1934_v51 = vpop.f32.mrb[105].mxu1 }
 0x53c   : > { %v1935_v52 = vadd.f32 %v1934_v51, %v4415_v15  ;;  %v3451_v53 = vpop.f32.mrb[106].mxu1 }
 0x53d   : > { %v2039_v54 = vmul.f32 0.01, %v1943_v50  ;;  %v1946_v55 = vadd.f32 %v3451_v53, %v4415_v15  ;;  %v1937_v57 = vpop.f32.mrb[107].mxu1 }
 0x53e   : > { %v2037_v59 = vmul.f32 0.01, %v1935_v52  ;;  %v1938_v61 = vadd.f32 %v1937_v57, %v4415_v15  ;;  %2276 = vmatmul.mubr.bf16.gmra.mrb[76].mxu0 %v2096_v45 }
 0x53f   : > { %v2040_v63 = vmul.f32 0.01, %v1946_v55  ;;  %2285 = vmatprep.mubr.bf16.mxu0 %v3930_v13  ;;  %v2071_v2 = vmax.f32 %v1943_v50, %v2039_v54 }
 0x540   : > { %v2038_v1 = vmul.f32 0.01, %v1938_v61  ;;  %v2069_v5 = vmax.f32 %v1935_v52, %v2037_v59 }
 0x541   : > { %v2072_v3 = vmax.f32 %v1946_v55, %v2040_v63 }
 0x542   : > { %v2070_v6 = vmax.f32 %v1938_v61, %v2038_v1 }
 0x543   : > { %v2098_v7 = vpack.c.bf16 %v2072_v3, %v2071_v2 }
 0x544   : > { %v2097_v8 = vpack.c.bf16 %v2070_v6, %v2069_v5 }
 0x546   : > { %2286 = vmatmul.mubr.bf16.gmra.mrb[80].mxu0 %v2097_v8 }
 0x547   : > { %2295 = vmatprep.mubr.bf16.mxu0 %v3930_v13 }
 0x54a   : > { %v3454_v41 = vpop.f32.mrb[108].mxu1 }
 0x54b   : > { %v1959_v9 = vadd.f32 %v3454_v41, %v4415_v15  ;;  %v1950_v10 = vpop.f32.mrb[109].mxu1 }
 0x54c   : > { %v1951_v11 = vadd.f32 %v1950_v10, %v4415_v15  ;;  %v3455_v12 = vpop.f32.mrb[110].mxu1 }
 0x54d   : > { %v2043_v47 = vmul.f32 0.01, %v1959_v9  ;;  %v1962_v16 = vadd.f32 %v3455_v12, %v4415_v15  ;;  %v1953_v17 = vpop.f32.mrb[111].mxu1 }
 0x54e   : > { %v2041_v18 = vmul.f32 0.01, %v1951_v11  ;;  %v1954_v19 = vadd.f32 %v1953_v17, %v4415_v15  ;;  %2296 = vmatmul.mubr.bf16.gmra.mrb[84].mxu0 %v2098_v7 }
 0x54f   : > { %v2044_v20 = vmul.f32 0.01, %v1962_v16  ;;  %2305 = vmatprep.mubr.bf16.mxu0 %v3930_v13  ;;  %v2075_v22 = vmax.f32 %v1959_v9, %v2043_v47 }
 0x550   : > { %v2042_v21 = vmul.f32 0.01, %v1954_v19  ;;  %v2073_v24 = vmax.f32 %v1951_v11, %v2041_v18 }
 0x551   : > { %v2076_v23 = vmax.f32 %v1962_v16, %v2044_v20 }
 0x552   : > { %v2074_v56 = vmax.f32 %v1954_v19, %v2042_v21  ;;  %v3458_v25 = vpop.f32.mrb[112].mxu1 }
 0x553   : > { %v1975_v26 = vadd.f32 %v3458_v25, %v4415_v15  ;;  %v1966_v28 = vpop.f32.mrb[113].mxu1  ;;  %v2100_v60 = vpack.c.bf16 %v2076_v23, %v2075_v22 }
 0x554   : > { %v1967_v29 = vadd.f32 %v1966_v28, %v4415_v15  ;;  %v3459_v30 = vpop.f32.mrb[114].mxu1  ;;  %v2099_v32 = vpack.c.bf16 %v2074_v56, %v2073_v24 }
 0x555   : > { %v2047_v33 = vmul.f32 0.01, %v1975_v26  ;;  %v1978_v34 = vadd.f32 %v3459_v30, %v4415_v15  ;;  %v1969_v35 = vpop.f32.mrb[115].mxu1 }
 0x556   : > { %v2045_v36 = vmul.f32 0.01, %v1967_v29  ;;  %v1970_v62 = vadd.f32 %v1969_v35, %v4415_v15  ;;  %2306 = vmatmul.mubr.bf16.gmra.mrb[88].mxu0 %v2099_v32 }
 0x557   : > { %v2048_v38 = vmul.f32 0.01, %v1978_v34  ;;  %2315 = vmatprep.mubr.bf16.mxu0 %v3930_v13  ;;  %v2079_v39 = vmax.f32 %v1975_v26, %v2047_v33 }
 0x558   : > { %v2046_v14 = vmul.f32 0.01, %v1970_v62  ;;  %v2077_v4 = vmax.f32 %v1967_v29, %v2045_v36 }
 0x559   : > { %v2080_v37 = vmax.f32 %v1978_v34, %v2048_v38 }
 0x55a   : > { %v2078_v31 = vmax.f32 %v1970_v62, %v2046_v14  ;;  %v3462_v0 = vpop.f32.mrb[116].mxu1 }
 0x55b   : > { %v1991_v27 = vadd.f32 %v3462_v0, %v4415_v15  ;;  %v1982_v40 = vpop.f32.mrb[117].mxu1  ;;  %v2102_v42 = vpack.c.bf16 %v2080_v37, %v2079_v39  ;;  %v304_v39 = vld [vmem:[#allocation10 + $0x8] sm:$0xff] }
 0x55c   : > { %v1983_v43 = vadd.f32 %v1982_v40, %v4415_v15  ;;  %v3463_v44 = vpop.f32.mrb[118].mxu1  ;;  %v2101_v45 = vpack.c.bf16 %v2078_v31, %v2077_v4 }
 0x55d   : > { %v2051_v48 = vmul.f32 0.01, %v1991_v27  ;;  %v1994_v49 = vadd.f32 %v3463_v44, %v4415_v15  ;;  %v1985_v50 = vpop.f32.mrb[119].mxu1 }
 0x55e   : > { %v2049_v51 = vmul.f32 0.01, %v1983_v43  ;;  %v1986_v52 = vadd.f32 %v1985_v50, %v4415_v15  ;;  %2316 = vmatmul.mubr.bf16.gmra.mrb[92].mxu0 %v2100_v60 }
 0x55f   : > { %v2052_v53 = vmul.f32 0.01, %v1994_v49  ;;  %2325 = vmatprep.mubr.bf16.mxu0 %v3930_v13  ;;  %v2083_v55 = vmax.f32 %v1991_v27, %v2051_v48 }
 0x560   : > { %v2050_v54 = vmul.f32 0.01, %v1986_v52  ;;  %v2081_v59 = vmax.f32 %v1983_v43, %v2049_v51 }
 0x561   : > { %v2084_v57 = vmax.f32 %v1994_v49, %v2052_v53 }
 0x562   : > { %v2082_v61 = vmax.f32 %v1986_v52, %v2050_v54  ;;  %v3466_v63 = vpop.f32.mrb[120].mxu1 }
 0x563   : > { %v2007_v1 = vadd.f32 %v3466_v63, %v4415_v15  ;;  %v1998_v2 = vpop.f32.mrb[121].mxu1  ;;  %v2104_v3 = vpack.c.bf16 %v2084_v57, %v2083_v55 }
 0x564   : > { %v1999_v5 = vadd.f32 %v1998_v2, %v4415_v15  ;;  %v3467_v6 = vpop.f32.mrb[122].mxu1  ;;  %v2103_v7 = vpack.c.bf16 %v2082_v61, %v2081_v59 }
 0x565   : > { %v2055_v8 = vmul.f32 0.01, %v2007_v1  ;;  %v2010_v41 = vadd.f32 %v3467_v6, %v4415_v15  ;;  %v2001_v9 = vpop.f32.mrb[123].mxu1 }
 0x566   : > { %v2053_v10 = vmul.f32 0.01, %v1999_v5  ;;  %v2002_v11 = vadd.f32 %v2001_v9, %v4415_v15  ;;  %2326 = vmatmul.mubr.bf16.gmra.mrb[96].mxu0 %v2101_v45 }
 0x567   : > { %v2056_v12 = vmul.f32 0.01, %v2010_v41  ;;  %2335 = vmatprep.mubr.bf16.mxu0 %v3930_v13  ;;  %v2087_v16 = vmax.f32 %v2007_v1, %v2055_v8 }
 0x568   : > { %v2054_v47 = vmul.f32 0.01, %v2002_v11  ;;  %v2085_v18 = vmax.f32 %v1999_v5, %v2053_v10 }
 0x569   : > { %v2088_v17 = vmax.f32 %v2010_v41, %v2056_v12 }
 0x56a   : > { %v2086_v19 = vmax.f32 %v2002_v11, %v2054_v47  ;;  %v3470_v20 = vpop.f32.mrb[124].mxu1 }
 0x56b   : > { %v2023_v21 = vadd.f32 %v3470_v20, %v4415_v15  ;;  %v2014_v22 = vpop.f32.mrb[125].mxu1  ;;  %v2106_v23 = vpack.c.bf16 %v2088_v17, %v2087_v16 }
 0x56c   : > { %v2015_v24 = vadd.f32 %v2014_v22, %v4415_v15  ;;  %v3471_v56 = vpop.f32.mrb[126].mxu1  ;;  %v2105_v25 = vpack.c.bf16 %v2086_v19, %v2085_v18 }
 0x56d   : > { %v2059_v26 = vmul.f32 0.01, %v2023_v21  ;;  %v2026_v28 = vadd.f32 %v3471_v56, %v4415_v15  ;;  %v2017_v60 = vpop.f32.mrb[127].mxu1 }
 0x56e   : > { %2336 = vmatmul.mubr.bf16.gmra.mrb[100].mxu0 %v2102_v42  ;;  %v2057_v29 = vmul.f32 0.01, %v2015_v24  ;;  %v2018_v30 = vadd.f32 %v2017_v60, %v4415_v15  ;;  %v2127_v15 = vsub.s32 5, %v4246_v58 }
 0x56f   : > { %v2091_v32 = vmax.f32 %v2023_v21, %v2059_v26  ;;  %v2060_v33 = vmul.f32 0.01, %v2026_v28  ;;  %2345 = vmatprep.mubr.bf16.mxu0 %v3930_v13 }
 0x570   : > { %v2089_v34 = vmax.f32 %v2015_v24, %v2057_v29  ;;  %v2058_v35 = vmul.f32 0.01, %v2018_v30  ;;  %v4466_v37 = vrot.slane %v4375_v46, %v2127_v15  ;;  %v4468_v4 = vrot.slane %v304_v39, %v2127_v15 }
 0x571   : > { %v2092_v36 = vmax.f32 %v2026_v28, %v2060_v33 }
 0x572   : > { %v2090_v62 = vmax.f32 %v2018_v30, %v2058_v35 }
 0x573   : > { %v2108_v38 = vpack.c.bf16 %v2092_v36, %v2091_v32 }
 0x574   : > { %v2107_v14 = vpack.c.bf16 %v2090_v62, %v2089_v34 }
 0x576   : > { %2346 = vmatmul.mubr.bf16.gmra.mrb[104].mxu0 %v2103_v7 }
 0x577   : > { %2355 = vmatprep.mubr.bf16.mxu0 %v3930_v13 }
 0x57e   : > { %2356 = vmatmul.mubr.bf16.gmra.mrb[108].mxu0 %v2104_v3 }
 0x57f   : > { %2365 = vmatprep.mubr.bf16.mxu0 %v3930_v13 }
 0x586   : > { %2366 = vmatmul.mubr.bf16.gmra.mrb[112].mxu0 %v2105_v25 }
 0x587   : > { %2375 = vmatprep.mubr.bf16.mxu0 %v3930_v13 }
 0x58e   : > { %2376 = vmatmul.mubr.bf16.gmra.mrb[116].mxu0 %v2106_v23 }
 0x58f   : > { %2385 = vmatprep.mubr.bf16.mxu0 %v3930_v13 }
 0x596   : > { %2386 = vmatmul.mubr.bf16.gmra.mrb[120].mxu0 %v2107_v14 }
 0x597   : > { %2395 = vmatprep.mubr.bf16.mxu0 %v3930_v13 }
 0x59e   : > { %2396 = vmatmul.mubr.bf16.gmra.mrb[124].mxu0 %v2108_v38 }
 0x5f9   : > { %v2247_v31 = vpop.f32.mrb[64].mxu0 }
 0x5fa   : > { %v2248_v0 = vadd.f32 %v2247_v31, %v4466_v37  ;;  %v2249_v27 = vpop.f32.mrb[65].mxu0 }
 0x5fb   : > { %v2250_v40 = vadd.f32 %v2249_v27, %v4468_v4  ;;  %v2251_v42 = vpop.f32.mrb[66].mxu0 }
 0x5fc   : > { %v2406_v43 = vmul.f32 0.01, %v2248_v0  ;;  %v2252_v13 = vadd.f32 %v2251_v42, %v4466_v37  ;;  %v2253_v44 = vpop.f32.mrb[67].mxu0 }
 0x5fd   : > { %v2407_v45 = vmul.f32 0.01, %v2250_v40  ;;  %v2254_v58 = vadd.f32 %v2253_v44, %v4468_v4 }
 0x5fe   : > { %v2470_v48 = vmax.f32 %v2248_v0, %v2406_v43  ;;  %v2408_v46 = vmul.f32 0.01, %v2252_v13 }
 0x5ff   : > { %v2471_v49 = vmax.f32 %v2250_v40, %v2407_v45  ;;  %v2409_v50 = vmul.f32 0.01, %v2254_v58 }
 0x600   : > { %v2472_v51 = vmax.f32 %v2252_v13, %v2408_v46 }
 0x601   : > { %v3038_v52 = vpack.c.bf16 %v2471_v49, %v2470_v48  ;;  %v2473_v53 = vmax.f32 %v2254_v58, %v2409_v50  ;;  %v2257_v54 = vpop.f32.mrb[68].mxu0 }
 0x602   : > { %v2258_v55 = vadd.f32 %v2257_v54, %v4466_v37  ;;  %v2259_v57 = vpop.f32.mrb[69].mxu0 }
 0x603   : > { %2726 = vst [vmem:[%s4477_s24] sm:$0xff] %v3038_v52  ;;  %v3039_v59 = vpack.c.bf16 %v2473_v53, %v2472_v51  ;;  %v2260_v61 = vadd.f32 %v2259_v57, %v4468_v4  ;;  %v2261_v63 = vpop.f32.mrb[70].mxu0 }
 0x604   : > { %v2410_v1 = vmul.f32 0.01, %v2258_v55  ;;  %v2262_v2 = vadd.f32 %v2261_v63, %v4466_v37  ;;  %v2263_v3 = vpop.f32.mrb[71].mxu0 }
 0x605   : > { %2727 = vst [vmem:[%s4477_s24 + $0x8] sm:$0xff] %v3039_v59  ;;  %v2411_v5 = vmul.f32 0.01, %v2260_v61  ;;  %v2264_v6 = vadd.f32 %v2263_v3, %v4468_v4 }
 0x606   : > { %v2474_v7 = vmax.f32 %v2258_v55, %v2410_v1  ;;  %v2412_v8 = vmul.f32 0.01, %v2262_v2 }
 0x607   : > { %v2475_v41 = vmax.f32 %v2260_v61, %v2411_v5  ;;  %v2413_v9 = vmul.f32 0.01, %v2264_v6 }
 0x608   : > { %v2476_v10 = vmax.f32 %v2262_v2, %v2412_v8 }
 0x609   : > { %v3040_v11 = vpack.c.bf16 %v2475_v41, %v2474_v7  ;;  %v2477_v12 = vmax.f32 %v2264_v6, %v2413_v9  ;;  %v2267_v47 = vpop.f32.mrb[72].mxu0 }
 0x60a   : > { %v2268_v16 = vadd.f32 %v2267_v47, %v4466_v37  ;;  %v2269_v17 = vpop.f32.mrb[73].mxu0 }
 0x60b   : > { %2728 = vst [vmem:[%s4477_s24 + $0x10] sm:$0xff] %v3040_v11  ;;  %v3041_v18 = vpack.c.bf16 %v2477_v12, %v2476_v10  ;;  %v2270_v19 = vadd.f32 %v2269_v17, %v4468_v4  ;;  %v2271_v20 = vpop.f32.mrb[74].mxu0 }
 0x60c   : > { %v2414_v21 = vmul.f32 0.01, %v2268_v16  ;;  %v2272_v22 = vadd.f32 %v2271_v20, %v4466_v37  ;;  %v2273_v23 = vpop.f32.mrb[75].mxu0 }
 0x60d   : > { %2729 = vst [vmem:[%s4477_s24 + $0x18] sm:$0xff] %v3041_v18  ;;  %v2415_v24 = vmul.f32 0.01, %v2270_v19  ;;  %v2274_v56 = vadd.f32 %v2273_v23, %v4468_v4 }
 0x60e   : > { %v2478_v25 = vmax.f32 %v2268_v16, %v2414_v21  ;;  %v2416_v26 = vmul.f32 0.01, %v2272_v22 }
 0x60f   : > { %v2479_v28 = vmax.f32 %v2270_v19, %v2415_v24  ;;  %v2417_v60 = vmul.f32 0.01, %v2274_v56 }
 0x610   : > { %v2480_v29 = vmax.f32 %v2272_v22, %v2416_v26 }
 0x611   : > { %v3042_v30 = vpack.c.bf16 %v2479_v28, %v2478_v25  ;;  %v2481_v32 = vmax.f32 %v2274_v56, %v2417_v60  ;;  %v2277_v33 = vpop.f32.mrb[76].mxu0 }
 0x612   : > { %v2278_v34 = vadd.f32 %v2277_v33, %v4466_v37  ;;  %v2279_v35 = vpop.f32.mrb[77].mxu0 }
 0x613   : > { %2730 = vst [vmem:[%s4477_s24 + $0x20] sm:$0xff] %v3042_v30  ;;  %v3043_v36 = vpack.c.bf16 %v2481_v32, %v2480_v29  ;;  %v2280_v62 = vadd.f32 %v2279_v35, %v4468_v4  ;;  %v2281_v38 = vpop.f32.mrb[78].mxu0 }
 0x614   : > { %v2418_v14 = vmul.f32 0.01, %v2278_v34  ;;  %v2282_v15 = vadd.f32 %v2281_v38, %v4466_v37  ;;  %v2283_v39 = vpop.f32.mrb[79].mxu0 }
 0x615   : > { %2731 = vst [vmem:[%s4477_s24 + $0x28] sm:$0xff] %v3043_v36  ;;  %v2419_v31 = vmul.f32 0.01, %v2280_v62  ;;  %v2284_v0 = vadd.f32 %v2283_v39, %v4468_v4 }
 0x616   : > { %v2482_v27 = vmax.f32 %v2278_v34, %v2418_v14  ;;  %v2420_v40 = vmul.f32 0.01, %v2282_v15 }
 0x617   : > { %v2483_v42 = vmax.f32 %v2280_v62, %v2419_v31  ;;  %v2421_v43 = vmul.f32 0.01, %v2284_v0 }
 0x618   : > { %v2484_v13 = vmax.f32 %v2282_v15, %v2420_v40 }
 0x619   : > { %v3044_v44 = vpack.c.bf16 %v2483_v42, %v2482_v27  ;;  %v2485_v45 = vmax.f32 %v2284_v0, %v2421_v43  ;;  %v2287_v58 = vpop.f32.mrb[80].mxu0 }
 0x61a   : > { %v2288_v48 = vadd.f32 %v2287_v58, %v4466_v37  ;;  %v2289_v46 = vpop.f32.mrb[81].mxu0 }
 0x61b   : > { %2732 = vst [vmem:[%s4477_s24 + $0x30] sm:$0xff] %v3044_v44  ;;  %v3045_v49 = vpack.c.bf16 %v2485_v45, %v2484_v13  ;;  %v2290_v50 = vadd.f32 %v2289_v46, %v4468_v4  ;;  %v2291_v51 = vpop.f32.mrb[82].mxu0 }
 0x61c   : > { %v2422_v52 = vmul.f32 0.01, %v2288_v48  ;;  %v2292_v53 = vadd.f32 %v2291_v51, %v4466_v37  ;;  %v2293_v54 = vpop.f32.mrb[83].mxu0 }
 0x61d   : > { %2733 = vst [vmem:[%s4477_s24 + $0x38] sm:$0xff] %v3045_v49  ;;  %v2423_v55 = vmul.f32 0.01, %v2290_v50  ;;  %v2294_v57 = vadd.f32 %v2293_v54, %v4468_v4 }
 0x61e   : > { %v2486_v59 = vmax.f32 %v2288_v48, %v2422_v52  ;;  %v2424_v61 = vmul.f32 0.01, %v2292_v53 }
 0x61f   : > { %v2487_v63 = vmax.f32 %v2290_v50, %v2423_v55  ;;  %v2425_v1 = vmul.f32 0.01, %v2294_v57 }
 0x620   : > { %v2488_v2 = vmax.f32 %v2292_v53, %v2424_v61 }
 0x621   : > { %v3046_v3 = vpack.c.bf16 %v2487_v63, %v2486_v59  ;;  %v2489_v5 = vmax.f32 %v2294_v57, %v2425_v1  ;;  %v2297_v6 = vpop.f32.mrb[84].mxu0 }
 0x622   : > { %v2298_v7 = vadd.f32 %v2297_v6, %v4466_v37  ;;  %v2299_v8 = vpop.f32.mrb[85].mxu0 }
 0x623   : > { %2734 = vst [vmem:[%s4477_s24 + $0x40] sm:$0xff] %v3046_v3  ;;  %v3047_v41 = vpack.c.bf16 %v2489_v5, %v2488_v2  ;;  %v2300_v9 = vadd.f32 %v2299_v8, %v4468_v4  ;;  %v2301_v10 = vpop.f32.mrb[86].mxu0 }
 0x624   : > { %v2426_v11 = vmul.f32 0.01, %v2298_v7  ;;  %v2302_v12 = vadd.f32 %v2301_v10, %v4466_v37  ;;  %v2303_v47 = vpop.f32.mrb[87].mxu0 }
 0x625   : > { %2735 = vst [vmem:[%s4477_s24 + $0x48] sm:$0xff] %v3047_v41  ;;  %v2427_v16 = vmul.f32 0.01, %v2300_v9  ;;  %v2304_v17 = vadd.f32 %v2303_v47, %v4468_v4 }
 0x626   : > { %v2490_v18 = vmax.f32 %v2298_v7, %v2426_v11  ;;  %v2428_v19 = vmul.f32 0.01, %v2302_v12 }
 0x627   : > { %v2491_v20 = vmax.f32 %v2300_v9, %v2427_v16  ;;  %v2429_v21 = vmul.f32 0.01, %v2304_v17 }
 0x628   : > { %v2492_v22 = vmax.f32 %v2302_v12, %v2428_v19 }
 0x629   : > { %v3048_v23 = vpack.c.bf16 %v2491_v20, %v2490_v18  ;;  %v2493_v24 = vmax.f32 %v2304_v17, %v2429_v21  ;;  %v2307_v56 = vpop.f32.mrb[88].mxu0 }
 0x62a   : > { %v2308_v25 = vadd.f32 %v2307_v56, %v4466_v37  ;;  %v2309_v26 = vpop.f32.mrb[89].mxu0 }
 0x62b   : > { %2736 = vst [vmem:[%s4477_s24 + $0x50] sm:$0xff] %v3048_v23  ;;  %v3049_v28 = vpack.c.bf16 %v2493_v24, %v2492_v22  ;;  %v2310_v60 = vadd.f32 %v2309_v26, %v4468_v4  ;;  %v2311_v29 = vpop.f32.mrb[90].mxu0 }
 0x62c   : > { %v2430_v30 = vmul.f32 0.01, %v2308_v25  ;;  %v2312_v32 = vadd.f32 %v2311_v29, %v4466_v37  ;;  %v2313_v33 = vpop.f32.mrb[91].mxu0 }
 0x62d   : > { %2737 = vst [vmem:[%s4477_s24 + $0x58] sm:$0xff] %v3049_v28  ;;  %v2431_v34 = vmul.f32 0.01, %v2310_v60  ;;  %v2314_v35 = vadd.f32 %v2313_v33, %v4468_v4 }
 0x62e   : > { %v2494_v36 = vmax.f32 %v2308_v25, %v2430_v30  ;;  %v2432_v62 = vmul.f32 0.01, %v2312_v32 }
 0x62f   : > { %v2495_v38 = vmax.f32 %v2310_v60, %v2431_v34  ;;  %v2433_v14 = vmul.f32 0.01, %v2314_v35 }
 0x630   : > { %v2496_v15 = vmax.f32 %v2312_v32, %v2432_v62 }
 0x631   : > { %v3050_v39 = vpack.c.bf16 %v2495_v38, %v2494_v36  ;;  %v2497_v31 = vmax.f32 %v2314_v35, %v2433_v14  ;;  %v2317_v0 = vpop.f32.mrb[92].mxu0 }
 0x632   : > { %v2318_v27 = vadd.f32 %v2317_v0, %v4466_v37  ;;  %v2319_v40 = vpop.f32.mrb[93].mxu0 }
 0x633   : > { %2738 = vst [vmem:[%s4477_s24 + $0x60] sm:$0xff] %v3050_v39  ;;  %v3051_v42 = vpack.c.bf16 %v2497_v31, %v2496_v15  ;;  %v2320_v43 = vadd.f32 %v2319_v40, %v4468_v4  ;;  %v2321_v13 = vpop.f32.mrb[94].mxu0 }
 0x634   : > { %v2434_v44 = vmul.f32 0.01, %v2318_v27  ;;  %v2322_v45 = vadd.f32 %v2321_v13, %v4466_v37  ;;  %v2323_v58 = vpop.f32.mrb[95].mxu0 }
 0x635   : > { %2739 = vst [vmem:[%s4477_s24 + $0x68] sm:$0xff] %v3051_v42  ;;  %v2435_v48 = vmul.f32 0.01, %v2320_v43  ;;  %v2324_v46 = vadd.f32 %v2323_v58, %v4468_v4 }
 0x636   : > { %v2498_v49 = vmax.f32 %v2318_v27, %v2434_v44  ;;  %v2436_v50 = vmul.f32 0.01, %v2322_v45 }
 0x637   : > { %v2499_v51 = vmax.f32 %v2320_v43, %v2435_v48  ;;  %v2437_v52 = vmul.f32 0.01, %v2324_v46 }
 0x638   : > { %v2500_v53 = vmax.f32 %v2322_v45, %v2436_v50 }
 0x639   : > { %v3052_v54 = vpack.c.bf16 %v2499_v51, %v2498_v49  ;;  %v2501_v55 = vmax.f32 %v2324_v46, %v2437_v52  ;;  %v2327_v57 = vpop.f32.mrb[96].mxu0 }
 0x63a   : > { %v2328_v59 = vadd.f32 %v2327_v57, %v4466_v37  ;;  %v2329_v61 = vpop.f32.mrb[97].mxu0 }
 0x63b   : > { %2740 = vst [vmem:[%s4477_s24 + $0x70] sm:$0xff] %v3052_v54  ;;  %v3053_v63 = vpack.c.bf16 %v2501_v55, %v2500_v53  ;;  %v2330_v1 = vadd.f32 %v2329_v61, %v4468_v4  ;;  %v2331_v2 = vpop.f32.mrb[98].mxu0 }
 0x63c   : > { %v2438_v3 = vmul.f32 0.01, %v2328_v59  ;;  %v2332_v5 = vadd.f32 %v2331_v2, %v4466_v37  ;;  %v2333_v6 = vpop.f32.mrb[99].mxu0 }
 0x63d   : > { %2741 = vst [vmem:[%s4477_s24 + $0x78] sm:$0xff] %v3053_v63  ;;  %v2439_v7 = vmul.f32 0.01, %v2330_v1  ;;  %v2334_v8 = vadd.f32 %v2333_v6, %v4468_v4 }
 0x63e   : > { %v2502_v41 = vmax.f32 %v2328_v59, %v2438_v3  ;;  %v2440_v9 = vmul.f32 0.01, %v2332_v5 }
 0x63f   : > { %v2503_v10 = vmax.f32 %v2330_v1, %v2439_v7  ;;  %v2441_v11 = vmul.f32 0.01, %v2334_v8 }
 0x640   : > { %v2504_v12 = vmax.f32 %v2332_v5, %v2440_v9 }
 0x641   : > { %v3054_v47 = vpack.c.bf16 %v2503_v10, %v2502_v41  ;;  %v2505_v16 = vmax.f32 %v2334_v8, %v2441_v11  ;;  %v2337_v17 = vpop.f32.mrb[100].mxu0 }
 0x642   : > { %v2338_v18 = vadd.f32 %v2337_v17, %v4466_v37  ;;  %v2339_v19 = vpop.f32.mrb[101].mxu0 }
 0x643   : > { %2742 = vst [vmem:[%s4477_s24 + $0x80] sm:$0xff] %v3054_v47  ;;  %v3055_v20 = vpack.c.bf16 %v2505_v16, %v2504_v12  ;;  %v2340_v21 = vadd.f32 %v2339_v19, %v4468_v4  ;;  %v2341_v22 = vpop.f32.mrb[102].mxu0 }
 0x644   : > { %v2442_v23 = vmul.f32 0.01, %v2338_v18  ;;  %v2342_v24 = vadd.f32 %v2341_v22, %v4466_v37  ;;  %v2343_v56 = vpop.f32.mrb[103].mxu0 }
 0x645   : > { %2743 = vst [vmem:[%s4477_s24 + $0x88] sm:$0xff] %v3055_v20  ;;  %v2443_v25 = vmul.f32 0.01, %v2340_v21  ;;  %v2344_v26 = vadd.f32 %v2343_v56, %v4468_v4 }
 0x646   : > { %v2506_v28 = vmax.f32 %v2338_v18, %v2442_v23  ;;  %v2444_v60 = vmul.f32 0.01, %v2342_v24 }
 0x647   : > { %v2507_v29 = vmax.f32 %v2340_v21, %v2443_v25  ;;  %v2445_v30 = vmul.f32 0.01, %v2344_v26 }
 0x648   : > { %v2508_v32 = vmax.f32 %v2342_v24, %v2444_v60 }
 0x649   : > { %v3056_v33 = vpack.c.bf16 %v2507_v29, %v2506_v28  ;;  %v2509_v34 = vmax.f32 %v2344_v26, %v2445_v30  ;;  %v2347_v35 = vpop.f32.mrb[104].mxu0 }
 0x64a   : > { %v2348_v36 = vadd.f32 %v2347_v35, %v4466_v37  ;;  %v2349_v62 = vpop.f32.mrb[105].mxu0 }
 0x64b   : > { %2744 = vst [vmem:[%s4477_s24 + $0x90] sm:$0xff] %v3056_v33  ;;  %v3057_v38 = vpack.c.bf16 %v2509_v34, %v2508_v32  ;;  %v2350_v14 = vadd.f32 %v2349_v62, %v4468_v4  ;;  %v2351_v15 = vpop.f32.mrb[106].mxu0 }
 0x64c   : > { %v2446_v39 = vmul.f32 0.01, %v2348_v36  ;;  %v2352_v31 = vadd.f32 %v2351_v15, %v4466_v37  ;;  %v2353_v0 = vpop.f32.mrb[107].mxu0 }
 0x64d   : > { %2745 = vst [vmem:[%s4477_s24 + $0x98] sm:$0xff] %v3057_v38  ;;  %v2447_v27 = vmul.f32 0.01, %v2350_v14  ;;  %v2354_v40 = vadd.f32 %v2353_v0, %v4468_v4 }
 0x64e   : > { %v2510_v42 = vmax.f32 %v2348_v36, %v2446_v39  ;;  %v2448_v43 = vmul.f32 0.01, %v2352_v31 }
 0x64f   : > { %v2511_v13 = vmax.f32 %v2350_v14, %v2447_v27  ;;  %v2449_v44 = vmul.f32 0.01, %v2354_v40 }
 0x650   : > { %v2512_v45 = vmax.f32 %v2352_v31, %v2448_v43 }
 0x651   : > { %v3058_v58 = vpack.c.bf16 %v2511_v13, %v2510_v42  ;;  %v2513_v48 = vmax.f32 %v2354_v40, %v2449_v44  ;;  %v2357_v46 = vpop.f32.mrb[108].mxu0 }
 0x652   : > { %v2358_v49 = vadd.f32 %v2357_v46, %v4466_v37  ;;  %v2359_v50 = vpop.f32.mrb[109].mxu0 }
 0x653   : > { %2746 = vst [vmem:[%s4477_s24 + $0xa0] sm:$0xff] %v3058_v58  ;;  %v3059_v51 = vpack.c.bf16 %v2513_v48, %v2512_v45  ;;  %v2360_v52 = vadd.f32 %v2359_v50, %v4468_v4  ;;  %v2361_v53 = vpop.f32.mrb[110].mxu0 }
 0x654   : > { %v2450_v54 = vmul.f32 0.01, %v2358_v49  ;;  %v2362_v55 = vadd.f32 %v2361_v53, %v4466_v37  ;;  %v2363_v57 = vpop.f32.mrb[111].mxu0 }
 0x655   : > { %2747 = vst [vmem:[%s4477_s24 + $0xa8] sm:$0xff] %v3059_v51  ;;  %v2451_v59 = vmul.f32 0.01, %v2360_v52  ;;  %v2364_v61 = vadd.f32 %v2363_v57, %v4468_v4 }
 0x656   : > { %v2514_v63 = vmax.f32 %v2358_v49, %v2450_v54  ;;  %v2452_v1 = vmul.f32 0.01, %v2362_v55 }
 0x657   : > { %v2515_v2 = vmax.f32 %v2360_v52, %v2451_v59  ;;  %v2453_v3 = vmul.f32 0.01, %v2364_v61 }
 0x658   : > { %v2516_v5 = vmax.f32 %v2362_v55, %v2452_v1 }
 0x659   : > { %v3060_v6 = vpack.c.bf16 %v2515_v2, %v2514_v63  ;;  %v2517_v7 = vmax.f32 %v2364_v61, %v2453_v3  ;;  %v2367_v8 = vpop.f32.mrb[112].mxu0 }
 0x65a   : > { %v2368_v41 = vadd.f32 %v2367_v8, %v4466_v37  ;;  %v2369_v9 = vpop.f32.mrb[113].mxu0 }
 0x65b   : > { %2748 = vst [vmem:[%s4477_s24 + $0xb0] sm:$0xff] %v3060_v6  ;;  %v3061_v10 = vpack.c.bf16 %v2517_v7, %v2516_v5  ;;  %v2370_v11 = vadd.f32 %v2369_v9, %v4468_v4  ;;  %v2371_v12 = vpop.f32.mrb[114].mxu0 }
 0x65c   : > { %v2454_v47 = vmul.f32 0.01, %v2368_v41  ;;  %v2372_v16 = vadd.f32 %v2371_v12, %v4466_v37  ;;  %v2373_v17 = vpop.f32.mrb[115].mxu0 }
 0x65d   : > { %2749 = vst [vmem:[%s4477_s24 + $0xb8] sm:$0xff] %v3061_v10  ;;  %v2455_v18 = vmul.f32 0.01, %v2370_v11  ;;  %v2374_v19 = vadd.f32 %v2373_v17, %v4468_v4 }
 0x65e   : > { %v2518_v20 = vmax.f32 %v2368_v41, %v2454_v47  ;;  %v2456_v21 = vmul.f32 0.01, %v2372_v16 }
 0x65f   : > { %v2519_v22 = vmax.f32 %v2370_v11, %v2455_v18  ;;  %v2457_v23 = vmul.f32 0.01, %v2374_v19 }
 0x660   : > { %v2520_v24 = vmax.f32 %v2372_v16, %v2456_v21 }
 0x661   : > { %v3062_v56 = vpack.c.bf16 %v2519_v22, %v2518_v20  ;;  %v2521_v25 = vmax.f32 %v2374_v19, %v2457_v23  ;;  %v2377_v26 = vpop.f32.mrb[116].mxu0 }
 0x662   : > { %v2378_v28 = vadd.f32 %v2377_v26, %v4466_v37  ;;  %v2379_v60 = vpop.f32.mrb[117].mxu0 }
 0x663   : > { %2750 = vst [vmem:[%s4477_s24 + $0xc0] sm:$0xff] %v3062_v56  ;;  %v3063_v29 = vpack.c.bf16 %v2521_v25, %v2520_v24  ;;  %v2380_v30 = vadd.f32 %v2379_v60, %v4468_v4  ;;  %v2381_v32 = vpop.f32.mrb[118].mxu0 }
 0x664   : > { %v2458_v33 = vmul.f32 0.01, %v2378_v28  ;;  %v2382_v34 = vadd.f32 %v2381_v32, %v4466_v37  ;;  %v2383_v35 = vpop.f32.mrb[119].mxu0 }
 0x665   : > { %2751 = vst [vmem:[%s4477_s24 + $0xc8] sm:$0xff] %v3063_v29  ;;  %v2459_v36 = vmul.f32 0.01, %v2380_v30  ;;  %v2384_v62 = vadd.f32 %v2383_v35, %v4468_v4 }
 0x666   : > { %v2522_v38 = vmax.f32 %v2378_v28, %v2458_v33  ;;  %v2460_v14 = vmul.f32 0.01, %v2382_v34 }
 0x667   : > { %v2523_v15 = vmax.f32 %v2380_v30, %v2459_v36  ;;  %v2461_v39 = vmul.f32 0.01, %v2384_v62 }
 0x668   : > { %v2524_v31 = vmax.f32 %v2382_v34, %v2460_v14 }
 0x669   : > { %v3064_v0 = vpack.c.bf16 %v2523_v15, %v2522_v38  ;;  %v2525_v27 = vmax.f32 %v2384_v62, %v2461_v39  ;;  %v2387_v40 = vpop.f32.mrb[120].mxu0 }
 0x66a   : > { %v2388_v42 = vadd.f32 %v2387_v40, %v4466_v37  ;;  %v2389_v43 = vpop.f32.mrb[121].mxu0 }
 0x66b   : > { %2752 = vst [vmem:[%s4477_s24 + $0xd0] sm:$0xff] %v3064_v0  ;;  %v3065_v13 = vpack.c.bf16 %v2525_v27, %v2524_v31  ;;  %v2390_v44 = vadd.f32 %v2389_v43, %v4468_v4  ;;  %v2391_v45 = vpop.f32.mrb[122].mxu0 }
 0x66c   : > { %v2462_v58 = vmul.f32 0.01, %v2388_v42  ;;  %v2392_v48 = vadd.f32 %v2391_v45, %v4466_v37  ;;  %v2393_v46 = vpop.f32.mrb[123].mxu0 }
 0x66d   : > { %2753 = vst [vmem:[%s4477_s24 + $0xd8] sm:$0xff] %v3065_v13  ;;  %v2463_v49 = vmul.f32 0.01, %v2390_v44  ;;  %v2394_v50 = vadd.f32 %v2393_v46, %v4468_v4 }
 0x66e   : > { %v2526_v51 = vmax.f32 %v2388_v42, %v2462_v58  ;;  %v2464_v52 = vmul.f32 0.01, %v2392_v48 }
 0x66f   : > { %v2527_v53 = vmax.f32 %v2390_v44, %v2463_v49  ;;  %v2465_v54 = vmul.f32 0.01, %v2394_v50 }
 0x670   : > { %v2528_v55 = vmax.f32 %v2392_v48, %v2464_v52 }
 0x671   : > { %v3066_v57 = vpack.c.bf16 %v2527_v53, %v2526_v51  ;;  %v2529_v59 = vmax.f32 %v2394_v50, %v2465_v54  ;;  %v2397_v61 = vpop.f32.mrb[124].mxu0 }
 0x672   : > { %v2398_v63 = vadd.f32 %v2397_v61, %v4466_v37  ;;  %v2399_v1 = vpop.f32.mrb[125].mxu0 }
 0x673   : > { %2754 = vst [vmem:[%s4477_s24 + $0xe0] sm:$0xff] %v3066_v57  ;;  %v3067_v2 = vpack.c.bf16 %v2529_v59, %v2528_v55  ;;  %v2400_v3 = vadd.f32 %v2399_v1, %v4468_v4  ;;  %v2401_v5 = vpop.f32.mrb[126].mxu0 }
 0x674   : > { %v2466_v6 = vmul.f32 0.01, %v2398_v63  ;;  %v2402_v7 = vadd.f32 %v2401_v5, %v4466_v37  ;;  %v2403_v8 = vpop.f32.mrb[127].mxu0 }
 0x675   : > { %2755 = vst [vmem:[%s4477_s24 + $0xe8] sm:$0xff] %v3067_v2  ;;  %v2467_v41 = vmul.f32 0.01, %v2400_v3  ;;  %v2404_v9 = vadd.f32 %v2403_v8, %v4468_v4 }
 0x676   : > { %v2530_v10 = vmax.f32 %v2398_v63, %v2466_v6  ;;  %v2468_v11 = vmul.f32 0.01, %v2402_v7 }
 0x677   : > { %v2531_v12 = vmax.f32 %v2400_v3, %v2467_v41  ;;  %v2469_v47 = vmul.f32 0.01, %v2404_v9 }
 0x678   : > { %v2532_v16 = vmax.f32 %v2402_v7, %v2468_v11 }
 0x679   : > { %v3068_v17 = vpack.c.bf16 %v2531_v12, %v2530_v10  ;;  %v2533_v18 = vmax.f32 %v2404_v9, %v2469_v47 }
 0x67b   : > { %2756 = vst [vmem:[%s4477_s24 + $0xf0] sm:$0xff] %v3068_v17  ;;  %v3069_v37 = vpack.c.bf16 %v2533_v18, %v2532_v16 }
 0x67d   : > { %2757 = vst [vmem:[%s4477_s24 + $0xf8] sm:$0xff] %v3069_v37 }
 0x67e   : > { %3858 = shalt.err (!%p3855_p13)
}
 0x67f   : > { %s3859_s30 = scalar_lea.hbm %s4573_s17, 4096  ;;  %s3863_s28 = scalar_lea.hbm %s4626_s5, 8192 }
 0x680   : > { %p3860_p9 = scmp.ne.s32.totalorder %s4573_s17, %s3859_s30  ;;  %p3864_p6 = scmp.lt.u32.totalorder %s4573_s17, %s4626_s5 }
 0x681   : > { %p3865_p4 = scmp.lt.u32.totalorder %s3863_s28, %s3859_s30  ;;  %p3867_p10 = scmp.lt.u32.totalorder %s3859_s30, %s4573_s17 }
 0x682   : > { %p3861_p0 = pnand %p3860_p9, %p4139_p3 }
 0x683   : > { %p3866_p8 = por %p3865_p4, %p3864_p6 }
 0x684   : > { %p3862_p11 = pneg %p3861_p0 }
 0x685   : > { %p3868_p5 = por %p3867_p10, %p3866_p8 }
 0x687   : > { %p3869_p7 = pnand %p3868_p5, %p3862_p11 }
 0x689   : > { %3872 = shalt.err (!%p3869_p7)
}
 0x68a   : > { %s3932_s26 = smov 128   ;;  %s3933_s15 = smov 8  }
 0x68b   : > { %3506 = dma.vmem_to_hbm [thread:$0]  (%p4139_p3), %s4575_s14, 4096, %s4573_s17, %s2759_s16, %s3932_s26, %s3932_s26, %s3933_s15  }
 0x68c PF: > { %s2788_s6 = sand.u32 1, %s3907_s18   ;;  %p4646_p12 = scmp.ne.s32.totalorder %s4632_s25, 0 }
 0x68d   : > { %p4647_p1 = scmp.ge.s32.totalorder %s3919_s21, 2  ;;  %s2789_s23 = scalar_lea.sflag [#allocation4], %s2788_s6 }
 0x68f   : > { %p3526_p2 = pnand %p4647_p1, %p4646_p12 }
 0x691   : > { %3902 = dma.done.wait (!%p3526_p2), %s2789_s23, 4096  }
 0x692   : > { %3904 = vsyncadd (!%p3526_p2), %s2789_s23, 4294963200  ;;  %p20_p13 = scmp.ge.s32.totalorder %s4126_s12, 4   ;;  %s4648_s18 = smov %s3911_s19 }
 0x693   : > { %s4649_s19 = smov %s3915_s20  ;;  %s4650_s20 = smov %s4135_s8 }
 0x694   : > { %s4651_s21 = smov %s4126_s12  ;;  %22 = sbr.rel (!%p20_p13) target bundleno = 7 (0x7), region = 104 }
 0x69b   :  { %2794 = vsyncpa [#allocation3], 1 }
 0x69c   :  { %2796 = vsyncpa [#allocation3 + $0x1], 1 }
 0x69d   :  { %2797 = vsyncpa [#allocation6], 1 }
 0x69e   :  { %2798 = vsyncpa [#allocation9], 1 }
 0x69f   :  { %2799 = vsyncpa [#allocation4], 1 }
 0x6a0   :  { %2801 = vsyncpa [#allocation4 + $0x1], 1 }

</bundles_post_ra>
